<compile_context>
chip_gen: v6e
topology: v6e:2x2x1
jax: 0.10.0
libtpu: 0.0.40
codegen_flags: <defaults>
</compile_context>

<pallas_src>
import jax
import jax.numpy as jnp
from jax.experimental import pallas as pl
from jax.experimental.pallas import tpu as pltpu


# ---------------------------------------------------------------------------
# Fused kernel
# ---------------------------------------------------------------------------

def _make_fused_kernel(*, wc, layers):
    """Builds the fused 4-conv kernel.

    wc:     canvas width (W + 2) -- all canvases are flattened (C, Hc*Wc).
    layers: list of 4 dicts of static ints: kh, kw, cout, ho, wo, slab.
    """
    l1, l2, l3, l4 = layers

    def conv_slab(read_cols, w_ref, b_ref, lay):
        """Valid conv over a flattened canvas.

        Returns (cout, slab) where lane j = y*wc + x holds output(y, x) for
        x < wo; lanes with x >= wo contain wrapped junk (never consumed for
        valid results downstream).
        """
        kh, kw, cout, slab = lay["kh"], lay["kw"], lay["cout"], lay["slab"]
        acc = jnp.zeros((cout, slab), jnp.float32)
        for dy in range(kh):
            for dx in range(kw):
                tap = dy * kw + dx
                src = read_cols(dy * wc + dx, slab)          # (cin, slab)
                acc = acc + jnp.dot(w_ref[tap], src,
                                    preferred_element_type=jnp.float32)
        return acc + b_ref[...]                               # (cout, 1) bcast

    def kernel(x_ref, w1_ref, w2_ref, w3_ref, w4_ref,
               b1_ref, b2_ref, b3_ref, b4_ref,
               o_ref, c1_ref, c2_ref, c3_ref):
        # conv1 (3x3, pad 1): the input canvas is the pre-padded image.
        a1 = conv_slab(lambda off, n: x_ref[0, :, off:off + n], w1_ref, b1_ref, l1)
        c1_ref[:, 0:l1["slab"]] = a1

        # conv2 (k1 x k1, valid).
        a2 = conv_slab(lambda off, n: c1_ref[:, off:off + n], w2_ref, b2_ref, l2)
        c2_ref[:, 0:l2["slab"]] = a2

        # conv3 (k2 x k2, valid): copy the valid Wo3-wide part of every output
        # row into a zeroed canvas at offset (1, 1) -- this *is* the zero
        # padding that conv4 (pad 1) needs.
        c3_ref[...] = jnp.zeros_like(c3_ref)
        a3 = conv_slab(lambda off, n: c2_ref[:, off:off + n], w3_ref, b3_ref, l3)
        for y in range(l3["ho"]):
            dst = (y + 1) * wc + 1
            c3_ref[:, dst:dst + l3["wo"]] = a3[:, y * wc:y * wc + l3["wo"]]

        # conv4 (3x3, pad 1 via canvas 3).  Store only valid columns so the
        # single HBM output block is fully dense: (3, Ho4*Wo4).
        a4 = conv_slab(lambda off, n: c3_ref[:, off:off + n], w4_ref, b4_ref, l4)
        for y in range(l4["ho"]):
            o_ref[0, :, y * l4["wo"]:(y + 1) * l4["wo"]] = (
                a4[:, y * wc:y * wc + l4["wo"]].astype(o_ref.dtype))

    return kernel


# ---------------------------------------------------------------------------
# Parameter packing (hoisted out of the per-forward path) and forward pass
# ---------------------------------------------------------------------------

def pack_sc_encoder_params(params):
    """One-time re-layout of (OIHW weight, bias, padding) into the kernel's
    packed form: weights (KH*KW, Cout, Cin), bias (Cout, 1)."""
    packed = []
    for w_oihw, bias, pad in params:
        cout, cin, kh, kw = w_oihw.shape
        w_p = jnp.transpose(w_oihw, (2, 3, 0, 1)).reshape(kh * kw, cout, cin)
        packed.append((w_p, bias.reshape(cout, 1), int(kh), int(pad)))
    return tuple(packed)


def sc_encoder_forward(packed_params, x_nchw):
    """Fused Pallas forward pass. Input/output are NCHW like the PyTorch module."""
    n, cin, h, w = x_nchw.shape
    ((w1p, b1c, kc1, p1), (w2p, b2c, kc2, p2),
     (w3p, b3c, kc3, p3), (w4p, b4c, kc4, p4)) = packed_params
    assert cin == 3 and (kc1, p1) == (3, 1) and p2 == 0 and p3 == 0 and (kc4, p4) == (3, 1)
    out_ch = w1p.shape[1]

    hc, wc = h + 2, w + 2                        # canvas = input padded by 1

    ho1, wo1 = h, w                              # conv1: 3x3, pad 1
    ho2, wo2 = ho1 - kc2 + 1, wo1 - kc2 + 1      # conv2: k1 x k1, valid
    ho3, wo3 = ho2 - kc3 + 1, wo2 - kc3 + 1      # conv3: k2 x k2, valid
    ho4, wo4 = ho3, wo3                          # conv4: 3x3, pad 1

    layers = [
        dict(kh=kc1, kw=kc1, cout=out_ch, ho=ho1, wo=wo1, slab=(ho1 - 1) * wc + wo1),
        dict(kh=kc2, kw=kc2, cout=out_ch, ho=ho2, wo=wo2, slab=(ho2 - 1) * wc + wo2),
        dict(kh=kc3, kw=kc3, cout=out_ch, ho=ho3, wo=wo3, slab=(ho3 - 1) * wc + wo3),
        dict(kh=kc4, kw=kc4, cout=3,      ho=ho4, wo=wo4, slab=(ho4 - 1) * wc + wo4),
    ]
    # every shifted lane-slice must stay inside the (hc*wc)-wide canvases
    for lay in layers:
        assert (lay["kh"] - 1) * wc + (lay["kw"] - 1) + lay["slab"] <= hc * wc

    # Single tiny pad of the network input (all inter-layer padding happens in
    # VMEM inside the kernel).  Channel-major + flattened spatial: (N, 3, Hc*Wc).
    x_canvas = jnp.pad(x_nchw, ((0, 0), (0, 0), (1, 1), (1, 1))).reshape(n, cin, hc * wc)

    kernel = _make_fused_kernel(wc=wc, layers=layers)

    out_flat = pl.pallas_call(
        kernel,
        out_shape=jax.ShapeDtypeStruct((n, 3, ho4 * wo4), x_nchw.dtype),
        grid=(n,),
        in_specs=[
            pl.BlockSpec((1, cin, hc * wc), lambda i: (i, 0, 0)),   # input canvas
            pl.BlockSpec(w1p.shape, lambda i: (0, 0, 0)),
            pl.BlockSpec(w2p.shape, lambda i: (0, 0, 0)),
            pl.BlockSpec(w3p.shape, lambda i: (0, 0, 0)),
            pl.BlockSpec(w4p.shape, lambda i: (0, 0, 0)),
            pl.BlockSpec(b1c.shape, lambda i: (0, 0)),
            pl.BlockSpec(b2c.shape, lambda i: (0, 0)),
            pl.BlockSpec(b3c.shape, lambda i: (0, 0)),
            pl.BlockSpec(b4c.shape, lambda i: (0, 0)),
        ],
        out_specs=pl.BlockSpec((1, 3, ho4 * wo4), lambda i: (i, 0, 0)),
        scratch_shapes=[
            pltpu.VMEM((out_ch, hc * wc), jnp.float32),   # conv1 output canvas
            pltpu.VMEM((out_ch, hc * wc), jnp.float32),   # conv2 output canvas
            pltpu.VMEM((out_ch, hc * wc), jnp.float32),   # conv3 output canvas (zero ring)
        ],
        compiler_params=pltpu.CompilerParams(
            dimension_semantics=("parallel",)),
    )(x_canvas, w1p, w2p, w3p, w4p, b1c, b2c, b3c, b4c)

    # Already channel-major (NCHW); just un-flatten the dense spatial axis.
    return out_flat.reshape(n, 3, ho4, wo4)


# ---------------------------------------------------------------------------
# sc_encoder: synthetic parameters + pure-JAX reference
# ---------------------------------------------------------------------------

def init_sc_encoder_params(key, k1, k2, out_ch):
    """Deterministic synthetic init. Weights stored OIHW (PyTorch convention)."""
    keys = jax.random.split(key, 8)

    def conv_init(kw_key, kb_key, cin, cout, k):
        fan_in = cin * k * k
        w = jax.random.normal(kw_key, (cout, cin, k, k), jnp.float32)
        w = w * (1.0 / jnp.sqrt(jnp.float32(fan_in)))
        bias = jax.random.normal(kb_key, (cout,), jnp.float32) * 0.01
        return w, bias

    w1, b1 = conv_init(keys[0], keys[1], 3, out_ch, 3)
    w2, b2 = conv_init(keys[2], keys[3], out_ch, out_ch, k1)
    w3, b3 = conv_init(keys[4], keys[5], out_ch, out_ch, k2)
    w4, b4 = conv_init(keys[6], keys[7], out_ch, 3, 3)
    # (weight_OIHW, bias, padding) per layer, matching the nn.Sequential
    return ((w1, b1, 1), (w2, b2, 0), (w3, b3, 0), (w4, b4, 1))


def sc_encoder_reference(params, x_nchw):
    """Pure-JAX reference (lax conv, full f32 precision) for correctness checking."""
    x = x_nchw
    for w_oihw, bias, pad in params:
        x = jax.lax.conv_general_dilated(
            x, w_oihw, window_strides=(1, 1),
            padding=((pad, pad), (pad, pad)),
            dimension_numbers=("NCHW", "OIHW", "NCHW"),
            precision=jax.lax.Precision.HIGHEST)
        x = x + bias[None, :, None, None]
    return x


if __name__ == "__main__":
    out_ch, k1, k2 = 8, 5, 3
    key = jax.random.PRNGKey(0)
    kx, kp = jax.random.split(key)

    x = jax.random.normal(kx, (2, 3, 16, 16), jnp.float32)   # NCHW, 3 in-channels
    params = init_sc_encoder_params(kp, k1, k2, out_ch)
    packed = pack_sc_encoder_params(params)                   # hoisted, one-time

    out = sc_encoder_forward(packed, x)
    out = jax.block_until_ready(out)

    ref = sc_encoder_reference(params, x)
    assert out.shape == ref.shape, (out.shape, ref.shape)
    # kernel matmuls run at default MXU precision (f32 accumulate), so compare
    # against the HIGHEST-precision reference with a loosened tolerance.
    if not jnp.allclose(out, ref, atol=5e-2, rtol=5e-2):
        max_err = float(jnp.max(jnp.abs(out - ref)))
        raise AssertionError(f"Pallas conv stack mismatch, max abs err = {max_err}")

    print("KERNEL_OK")
</pallas_src>

<mosaic_0001>
module attributes {stable_mosaic.version = 11 : i64} {
  func.func @kernel(%arg0: i32, %arg1: memref<1x3x324xf32, #tpu.memory_space<vmem>>, %arg2: memref<9x8x3xf32, #tpu.memory_space<vmem>>, %arg3: memref<25x8x8xf32, #tpu.memory_space<vmem>>, %arg4: memref<9x8x8xf32, #tpu.memory_space<vmem>>, %arg5: memref<9x3x8xf32, #tpu.memory_space<vmem>>, %arg6: memref<8x1xf32, #tpu.memory_space<vmem>>, %arg7: memref<8x1xf32, #tpu.memory_space<vmem>>, %arg8: memref<8x1xf32, #tpu.memory_space<vmem>>, %arg9: memref<3x1xf32, #tpu.memory_space<vmem>>, %arg10: memref<1x3x100xf32, #tpu.memory_space<vmem>>, %arg11: memref<8x324xf32, #tpu.memory_space<vmem>>, %arg12: memref<8x324xf32, #tpu.memory_space<vmem>>, %arg13: memref<8x324xf32, #tpu.memory_space<vmem>>) attributes {dimension_semantics = [#tpu.dimension_semantics<parallel>], iteration_bounds = array<i64: 2>, scalar_prefetch = 0 : i64, scratch_operands = 3 : i64, tpu.core_type = #tpu.core_type<tc>, window_params = [{transform_indices = @transform_0, window_bounds = array<i64: 1, 3, 324>}, {pipeline_mode = #tpu.pipeline_mode<synchronous>, transform_indices = @transform_1, window_bounds = array<i64: 9, 8, 3>}, {pipeline_mode = #tpu.pipeline_mode<synchronous>, transform_indices = @transform_2, window_bounds = array<i64: 25, 8, 8>}, {pipeline_mode = #tpu.pipeline_mode<synchronous>, transform_indices = @transform_3, window_bounds = array<i64: 9, 8, 8>}, {pipeline_mode = #tpu.pipeline_mode<synchronous>, transform_indices = @transform_4, window_bounds = array<i64: 9, 3, 8>}, {pipeline_mode = #tpu.pipeline_mode<synchronous>, transform_indices = @transform_5, window_bounds = array<i64: 8, 1>}, {pipeline_mode = #tpu.pipeline_mode<synchronous>, transform_indices = @transform_6, window_bounds = array<i64: 8, 1>}, {pipeline_mode = #tpu.pipeline_mode<synchronous>, transform_indices = @transform_7, window_bounds = array<i64: 8, 1>}, {pipeline_mode = #tpu.pipeline_mode<synchronous>, transform_indices = @transform_8, window_bounds = array<i64: 3, 1>}, {transform_indices = @transform_9, window_bounds = array<i64: 1, 3, 100>}]} {
    %cst = arith.constant 0.000000e+00 : f32
    %0 = vector.broadcast %cst : f32 to vector<8x286xf32>
    %c0 = arith.constant 0 : index
    %c0_0 = arith.constant 0 : index
    %c0_1 = arith.constant 0 : index
    %1 = vector.load %arg1[%c0, %c0_0, %c0_1] : memref<1x3x324xf32, #tpu.memory_space<vmem>>, vector<1x3x286xf32>
    %2 = vector.shape_cast %1 : vector<1x3x286xf32> to vector<3x286xf32>
    %c0_2 = arith.constant 0 : index
    %c0_3 = arith.constant 0 : index
    %c0_4 = arith.constant 0 : index
    %3 = vector.load %arg2[%c0_2, %c0_3, %c0_4] : memref<9x8x3xf32, #tpu.memory_space<vmem>>, vector<1x8x3xf32>
    %4 = vector.shape_cast %3 : vector<1x8x3xf32> to vector<8x3xf32>
    %cst_5 = arith.constant dense<0.000000e+00> : vector<8x286xf32>
    %5 = tpu.matmul %4, %2, %cst_5 {dimension_numbers = #tpu.dot_dimension_numbers<[1], [0], [0], [1], [0, 0, 1, 1], [], []>} : vector<8x3xf32>, vector<3x286xf32>, vector<8x286xf32> -> vector<8x286xf32>
    %6 = arith.addf %0, %5 : vector<8x286xf32>
    %c0_6 = arith.constant 0 : index
    %c0_7 = arith.constant 0 : index
    %c1 = arith.constant 1 : index
    %7 = vector.load %arg1[%c0_6, %c0_7, %c1] : memref<1x3x324xf32, #tpu.memory_space<vmem>>, vector<1x3x286xf32>
    %8 = vector.shape_cast %7 : vector<1x3x286xf32> to vector<3x286xf32>
    %c1_8 = arith.constant 1 : index
    %c0_9 = arith.constant 0 : index
    %c0_10 = arith.constant 0 : index
    %9 = vector.load %arg2[%c1_8, %c0_9, %c0_10] : memref<9x8x3xf32, #tpu.memory_space<vmem>>, vector<1x8x3xf32>
    %10 = vector.shape_cast %9 : vector<1x8x3xf32> to vector<8x3xf32>
    %cst_11 = arith.constant dense<0.000000e+00> : vector<8x286xf32>
    %11 = tpu.matmul %10, %8, %cst_11 {dimension_numbers = #tpu.dot_dimension_numbers<[1], [0], [0], [1], [0, 0, 1, 1], [], []>} : vector<8x3xf32>, vector<3x286xf32>, vector<8x286xf32> -> vector<8x286xf32>
    %12 = arith.addf %6, %11 : vector<8x286xf32>
    %c0_12 = arith.constant 0 : index
    %c0_13 = arith.constant 0 : index
    %c2 = arith.constant 2 : index
    %13 = vector.load %arg1[%c0_12, %c0_13, %c2] : memref<1x3x324xf32, #tpu.memory_space<vmem>>, vector<1x3x286xf32>
    %14 = vector.shape_cast %13 : vector<1x3x286xf32> to vector<3x286xf32>
    %c2_14 = arith.constant 2 : index
    %c0_15 = arith.constant 0 : index
    %c0_16 = arith.constant 0 : index
    %15 = vector.load %arg2[%c2_14, %c0_15, %c0_16] : memref<9x8x3xf32, #tpu.memory_space<vmem>>, vector<1x8x3xf32>
    %16 = vector.shape_cast %15 : vector<1x8x3xf32> to vector<8x3xf32>
    %cst_17 = arith.constant dense<0.000000e+00> : vector<8x286xf32>
    %17 = tpu.matmul %16, %14, %cst_17 {dimension_numbers = #tpu.dot_dimension_numbers<[1], [0], [0], [1], [0, 0, 1, 1], [], []>} : vector<8x3xf32>, vector<3x286xf32>, vector<8x286xf32> -> vector<8x286xf32>
    %18 = arith.addf %12, %17 : vector<8x286xf32>
    %c0_18 = arith.constant 0 : index
    %c0_19 = arith.constant 0 : index
    %c18 = arith.constant 18 : index
    %19 = vector.load %arg1[%c0_18, %c0_19, %c18] : memref<1x3x324xf32, #tpu.memory_space<vmem>>, vector<1x3x286xf32>
    %20 = vector.shape_cast %19 : vector<1x3x286xf32> to vector<3x286xf32>
    %c3 = arith.constant 3 : index
    %c0_20 = arith.constant 0 : index
    %c0_21 = arith.constant 0 : index
    %21 = vector.load %arg2[%c3, %c0_20, %c0_21] : memref<9x8x3xf32, #tpu.memory_space<vmem>>, vector<1x8x3xf32>
    %22 = vector.shape_cast %21 : vector<1x8x3xf32> to vector<8x3xf32>
    %cst_22 = arith.constant dense<0.000000e+00> : vector<8x286xf32>
    %23 = tpu.matmul %22, %20, %cst_22 {dimension_numbers = #tpu.dot_dimension_numbers<[1], [0], [0], [1], [0, 0, 1, 1], [], []>} : vector<8x3xf32>, vector<3x286xf32>, vector<8x286xf32> -> vector<8x286xf32>
    %24 = arith.addf %18, %23 : vector<8x286xf32>
    %c0_23 = arith.constant 0 : index
    %c0_24 = arith.constant 0 : index
    %c19 = arith.constant 19 : index
    %25 = vector.load %arg1[%c0_23, %c0_24, %c19] : memref<1x3x324xf32, #tpu.memory_space<vmem>>, vector<1x3x286xf32>
    %26 = vector.shape_cast %25 : vector<1x3x286xf32> to vector<3x286xf32>
    %c4 = arith.constant 4 : index
    %c0_25 = arith.constant 0 : index
    %c0_26 = arith.constant 0 : index
    %27 = vector.load %arg2[%c4, %c0_25, %c0_26] : memref<9x8x3xf32, #tpu.memory_space<vmem>>, vector<1x8x3xf32>
    %28 = vector.shape_cast %27 : vector<1x8x3xf32> to vector<8x3xf32>
    %cst_27 = arith.constant dense<0.000000e+00> : vector<8x286xf32>
    %29 = tpu.matmul %28, %26, %cst_27 {dimension_numbers = #tpu.dot_dimension_numbers<[1], [0], [0], [1], [0, 0, 1, 1], [], []>} : vector<8x3xf32>, vector<3x286xf32>, vector<8x286xf32> -> vector<8x286xf32>
    %30 = arith.addf %24, %29 : vector<8x286xf32>
    %c0_28 = arith.constant 0 : index
    %c0_29 = arith.constant 0 : index
    %c20 = arith.constant 20 : index
    %31 = vector.load %arg1[%c0_28, %c0_29, %c20] : memref<1x3x324xf32, #tpu.memory_space<vmem>>, vector<1x3x286xf32>
    %32 = vector.shape_cast %31 : vector<1x3x286xf32> to vector<3x286xf32>
    %c5 = arith.constant 5 : index
    %c0_30 = arith.constant 0 : index
    %c0_31 = arith.constant 0 : index
    %33 = vector.load %arg2[%c5, %c0_30, %c0_31] : memref<9x8x3xf32, #tpu.memory_space<vmem>>, vector<1x8x3xf32>
    %34 = vector.shape_cast %33 : vector<1x8x3xf32> to vector<8x3xf32>
    %cst_32 = arith.constant dense<0.000000e+00> : vector<8x286xf32>
    %35 = tpu.matmul %34, %32, %cst_32 {dimension_numbers = #tpu.dot_dimension_numbers<[1], [0], [0], [1], [0, 0, 1, 1], [], []>} : vector<8x3xf32>, vector<3x286xf32>, vector<8x286xf32> -> vector<8x286xf32>
    %36 = arith.addf %30, %35 : vector<8x286xf32>
    %c0_33 = arith.constant 0 : index
    %c0_34 = arith.constant 0 : index
    %c36 = arith.constant 36 : index
    %37 = vector.load %arg1[%c0_33, %c0_34, %c36] : memref<1x3x324xf32, #tpu.memory_space<vmem>>, vector<1x3x286xf32>
    %38 = vector.shape_cast %37 : vector<1x3x286xf32> to vector<3x286xf32>
    %c6 = arith.constant 6 : index
    %c0_35 = arith.constant 0 : index
    %c0_36 = arith.constant 0 : index
    %39 = vector.load %arg2[%c6, %c0_35, %c0_36] : memref<9x8x3xf32, #tpu.memory_space<vmem>>, vector<1x8x3xf32>
    %40 = vector.shape_cast %39 : vector<1x8x3xf32> to vector<8x3xf32>
    %cst_37 = arith.constant dense<0.000000e+00> : vector<8x286xf32>
    %41 = tpu.matmul %40, %38, %cst_37 {dimension_numbers = #tpu.dot_dimension_numbers<[1], [0], [0], [1], [0, 0, 1, 1], [], []>} : vector<8x3xf32>, vector<3x286xf32>, vector<8x286xf32> -> vector<8x286xf32>
    %42 = arith.addf %36, %41 : vector<8x286xf32>
    %c0_38 = arith.constant 0 : index
    %c0_39 = arith.constant 0 : index
    %c37 = arith.constant 37 : index
    %43 = vector.load %arg1[%c0_38, %c0_39, %c37] : memref<1x3x324xf32, #tpu.memory_space<vmem>>, vector<1x3x286xf32>
    %44 = vector.shape_cast %43 : vector<1x3x286xf32> to vector<3x286xf32>
    %c7 = arith.constant 7 : index
    %c0_40 = arith.constant 0 : index
    %c0_41 = arith.constant 0 : index
    %45 = vector.load %arg2[%c7, %c0_40, %c0_41] : memref<9x8x3xf32, #tpu.memory_space<vmem>>, vector<1x8x3xf32>
    %46 = vector.shape_cast %45 : vector<1x8x3xf32> to vector<8x3xf32>
    %cst_42 = arith.constant dense<0.000000e+00> : vector<8x286xf32>
    %47 = tpu.matmul %46, %44, %cst_42 {dimension_numbers = #tpu.dot_dimension_numbers<[1], [0], [0], [1], [0, 0, 1, 1], [], []>} : vector<8x3xf32>, vector<3x286xf32>, vector<8x286xf32> -> vector<8x286xf32>
    %48 = arith.addf %42, %47 : vector<8x286xf32>
    %c0_43 = arith.constant 0 : index
    %c0_44 = arith.constant 0 : index
    %c38 = arith.constant 38 : index
    %49 = vector.load %arg1[%c0_43, %c0_44, %c38] : memref<1x3x324xf32, #tpu.memory_space<vmem>>, vector<1x3x286xf32>
    %50 = vector.shape_cast %49 : vector<1x3x286xf32> to vector<3x286xf32>
    %c8 = arith.constant 8 : index
    %c0_45 = arith.constant 0 : index
    %c0_46 = arith.constant 0 : index
    %51 = vector.load %arg2[%c8, %c0_45, %c0_46] : memref<9x8x3xf32, #tpu.memory_space<vmem>>, vector<1x8x3xf32>
    %52 = vector.shape_cast %51 : vector<1x8x3xf32> to vector<8x3xf32>
    %cst_47 = arith.constant dense<0.000000e+00> : vector<8x286xf32>
    %53 = tpu.matmul %52, %50, %cst_47 {dimension_numbers = #tpu.dot_dimension_numbers<[1], [0], [0], [1], [0, 0, 1, 1], [], []>} : vector<8x3xf32>, vector<3x286xf32>, vector<8x286xf32> -> vector<8x286xf32>
    %54 = arith.addf %48, %53 : vector<8x286xf32>
    %c0_48 = arith.constant 0 : index
    %c0_49 = arith.constant 0 : index
    %55 = vector.load %arg6[%c0_48, %c0_49] : memref<8x1xf32, #tpu.memory_space<vmem>>, vector<8x1xf32>
    %56 = vector.broadcast %55 : vector<8x1xf32> to vector<8x286xf32>
    %57 = arith.addf %54, %56 : vector<8x286xf32>
    %c0_50 = arith.constant 0 : index
    %c0_51 = arith.constant 0 : index
    %58 = vector.load %arg11[%c0_50, %c0_51] : memref<8x324xf32, #tpu.memory_space<vmem>>, vector<8x286xf32>
    tpu.vector_store %arg11[%c0_50, %c0_51], %57 {strides = array<i32>} : memref<8x324xf32, #tpu.memory_space<vmem>>, vector<8x286xf32>,
    %cst_52 = arith.constant 0.000000e+00 : f32
    %59 = vector.broadcast %cst_52 : f32 to vector<8x210xf32>
    %c0_53 = arith.constant 0 : index
    %c0_54 = arith.constant 0 : index
    %60 = vector.load %arg11[%c0_53, %c0_54] : memref<8x324xf32, #tpu.memory_space<vmem>>, vector<8x210xf32>
    %c0_55 = arith.constant 0 : index
    %c0_56 = arith.constant 0 : index
    %c0_57 = arith.constant 0 : index
    %61 = vector.load %arg3[%c0_55, %c0_56, %c0_57] : memref<25x8x8xf32, #tpu.memory_space<vmem>>, vector<1x8x8xf32>
    %62 = vector.shape_cast %61 : vector<1x8x8xf32> to vector<8x8xf32>
    %cst_58 = arith.constant dense<0.000000e+00> : vector<8x210xf32>
    %63 = tpu.matmul %62, %60, %cst_58 {dimension_numbers = #tpu.dot_dimension_numbers<[1], [0], [0], [1], [0, 0, 1, 1], [], []>} : vector<8x8xf32>, vector<8x210xf32>, vector<8x210xf32> -> vector<8x210xf32>
    %64 = arith.addf %59, %63 : vector<8x210xf32>
    %c0_59 = arith.constant 0 : index
    %c1_60 = arith.constant 1 : index
    %65 = vector.load %arg11[%c0_59, %c1_60] : memref<8x324xf32, #tpu.memory_space<vmem>>, vector<8x210xf32>
    %c1_61 = arith.constant 1 : index
    %c0_62 = arith.constant 0 : index
    %c0_63 = arith.constant 0 : index
    %66 = vector.load %arg3[%c1_61, %c0_62, %c0_63] : memref<25x8x8xf32, #tpu.memory_space<vmem>>, vector<1x8x8xf32>
    %67 = vector.shape_cast %66 : vector<1x8x8xf32> to vector<8x8xf32>
    %cst_64 = arith.constant dense<0.000000e+00> : vector<8x210xf32>
    %68 = tpu.matmul %67, %65, %cst_64 {dimension_numbers = #tpu.dot_dimension_numbers<[1], [0], [0], [1], [0, 0, 1, 1], [], []>} : vector<8x8xf32>, vector<8x210xf32>, vector<8x210xf32> -> vector<8x210xf32>
    %69 = arith.addf %64, %68 : vector<8x210xf32>
    %c0_65 = arith.constant 0 : index
    %c2_66 = arith.constant 2 : index
    %70 = vector.load %arg11[%c0_65, %c2_66] : memref<8x324xf32, #tpu.memory_space<vmem>>, vector<8x210xf32>
    %c2_67 = arith.constant 2 : index
    %c0_68 = arith.constant 0 : index
    %c0_69 = arith.constant 0 : index
    %71 = vector.load %arg3[%c2_67, %c0_68, %c0_69] : memref<25x8x8xf32, #tpu.memory_space<vmem>>, vector<1x8x8xf32>
    %72 = vector.shape_cast %71 : vector<1x8x8xf32> to vector<8x8xf32>
    %cst_70 = arith.constant dense<0.000000e+00> : vector<8x210xf32>
    %73 = tpu.matmul %72, %70, %cst_70 {dimension_numbers = #tpu.dot_dimension_numbers<[1], [0], [0], [1], [0, 0, 1, 1], [], []>} : vector<8x8xf32>, vector<8x210xf32>, vector<8x210xf32> -> vector<8x210xf32>
    %74 = arith.addf %69, %73 : vector<8x210xf32>
    %c0_71 = arith.constant 0 : index
    %c3_72 = arith.constant 3 : index
    %75 = vector.load %arg11[%c0_71, %c3_72] : memref<8x324xf32, #tpu.memory_space<vmem>>, vector<8x210xf32>
    %c3_73 = arith.constant 3 : index
    %c0_74 = arith.constant 0 : index
    %c0_75 = arith.constant 0 : index
    %76 = vector.load %arg3[%c3_73, %c0_74, %c0_75] : memref<25x8x8xf32, #tpu.memory_space<vmem>>, vector<1x8x8xf32>
    %77 = vector.shape_cast %76 : vector<1x8x8xf32> to vector<8x8xf32>
    %cst_76 = arith.constant dense<0.000000e+00> : vector<8x210xf32>
    %78 = tpu.matmul %77, %75, %cst_76 {dimension_numbers = #tpu.dot_dimension_numbers<[1], [0], [0], [1], [0, 0, 1, 1], [], []>} : vector<8x8xf32>, vector<8x210xf32>, vector<8x210xf32> -> vector<8x210xf32>
    %79 = arith.addf %74, %78 : vector<8x210xf32>
    %c0_77 = arith.constant 0 : index
    %c4_78 = arith.constant 4 : index
    %80 = vector.load %arg11[%c0_77, %c4_78] : memref<8x324xf32, #tpu.memory_space<vmem>>, vector<8x210xf32>
    %c4_79 = arith.constant 4 : index
    %c0_80 = arith.constant 0 : index
    %c0_81 = arith.constant 0 : index
    %81 = vector.load %arg3[%c4_79, %c0_80, %c0_81] : memref<25x8x8xf32, #tpu.memory_space<vmem>>, vector<1x8x8xf32>
    %82 = vector.shape_cast %81 : vector<1x8x8xf32> to vector<8x8xf32>
    %cst_82 = arith.constant dense<0.000000e+00> : vector<8x210xf32>
    %83 = tpu.matmul %82, %80, %cst_82 {dimension_numbers = #tpu.dot_dimension_numbers<[1], [0], [0], [1], [0, 0, 1, 1], [], []>} : vector<8x8xf32>, vector<8x210xf32>, vector<8x210xf32> -> vector<8x210xf32>
    %84 = arith.addf %79, %83 : vector<8x210xf32>
    %c0_83 = arith.constant 0 : index
    %c18_84 = arith.constant 18 : index
    %85 = vector.load %arg11[%c0_83, %c18_84] : memref<8x324xf32, #tpu.memory_space<vmem>>, vector<8x210xf32>
    %c5_85 = arith.constant 5 : index
    %c0_86 = arith.constant 0 : index
    %c0_87 = arith.constant 0 : index
    %86 = vector.load %arg3[%c5_85, %c0_86, %c0_87] : memref<25x8x8xf32, #tpu.memory_space<vmem>>, vector<1x8x8xf32>
    %87 = vector.shape_cast %86 : vector<1x8x8xf32> to vector<8x8xf32>
    %cst_88 = arith.constant dense<0.000000e+00> : vector<8x210xf32>
    %88 = tpu.matmul %87, %85, %cst_88 {dimension_numbers = #tpu.dot_dimension_numbers<[1], [0], [0], [1], [0, 0, 1, 1], [], []>} : vector<8x8xf32>, vector<8x210xf32>, vector<8x210xf32> -> vector<8x210xf32>
    %89 = arith.addf %84, %88 : vector<8x210xf32>
    %c0_89 = arith.constant 0 : index
    %c19_90 = arith.constant 19 : index
    %90 = vector.load %arg11[%c0_89, %c19_90] : memref<8x324xf32, #tpu.memory_space<vmem>>, vector<8x210xf32>
    %c6_91 = arith.constant 6 : index
    %c0_92 = arith.constant 0 : index
    %c0_93 = arith.constant 0 : index
    %91 = vector.load %arg3[%c6_91, %c0_92, %c0_93] : memref<25x8x8xf32, #tpu.memory_space<vmem>>, vector<1x8x8xf32>
    %92 = vector.shape_cast %91 : vector<1x8x8xf32> to vector<8x8xf32>
    %cst_94 = arith.constant dense<0.000000e+00> : vector<8x210xf32>
    %93 = tpu.matmul %92, %90, %cst_94 {dimension_numbers = #tpu.dot_dimension_numbers<[1], [0], [0], [1], [0, 0, 1, 1], [], []>} : vector<8x8xf32>, vector<8x210xf32>, vector<8x210xf32> -> vector<8x210xf32>
    %94 = arith.addf %89, %93 : vector<8x210xf32>
    %c0_95 = arith.constant 0 : index
    %c20_96 = arith.constant 20 : index
    %95 = vector.load %arg11[%c0_95, %c20_96] : memref<8x324xf32, #tpu.memory_space<vmem>>, vector<8x210xf32>
    %c7_97 = arith.constant 7 : index
    %c0_98 = arith.constant 0 : index
    %c0_99 = arith.constant 0 : index
    %96 = vector.load %arg3[%c7_97, %c0_98, %c0_99] : memref<25x8x8xf32, #tpu.memory_space<vmem>>, vector<1x8x8xf32>
    %97 = vector.shape_cast %96 : vector<1x8x8xf32> to vector<8x8xf32>
    %cst_100 = arith.constant dense<0.000000e+00> : vector<8x210xf32>
    %98 = tpu.matmul %97, %95, %cst_100 {dimension_numbers = #tpu.dot_dimension_numbers<[1], [0], [0], [1], [0, 0, 1, 1], [], []>} : vector<8x8xf32>, vector<8x210xf32>, vector<8x210xf32> -> vector<8x210xf32>
    %99 = arith.addf %94, %98 : vector<8x210xf32>
    %c0_101 = arith.constant 0 : index
    %c21 = arith.constant 21 : index
    %100 = vector.load %arg11[%c0_101, %c21] : memref<8x324xf32, #tpu.memory_space<vmem>>, vector<8x210xf32>
    %c8_102 = arith.constant 8 : index
    %c0_103 = arith.constant 0 : index
    %c0_104 = arith.constant 0 : index
    %101 = vector.load %arg3[%c8_102, %c0_103, %c0_104] : memref<25x8x8xf32, #tpu.memory_space<vmem>>, vector<1x8x8xf32>
    %102 = vector.shape_cast %101 : vector<1x8x8xf32> to vector<8x8xf32>
    %cst_105 = arith.constant dense<0.000000e+00> : vector<8x210xf32>
    %103 = tpu.matmul %102, %100, %cst_105 {dimension_numbers = #tpu.dot_dimension_numbers<[1], [0], [0], [1], [0, 0, 1, 1], [], []>} : vector<8x8xf32>, vector<8x210xf32>, vector<8x210xf32> -> vector<8x210xf32>
    %104 = arith.addf %99, %103 : vector<8x210xf32>
    %c0_106 = arith.constant 0 : index
    %c22 = arith.constant 22 : index
    %105 = vector.load %arg11[%c0_106, %c22] : memref<8x324xf32, #tpu.memory_space<vmem>>, vector<8x210xf32>
    %c9 = arith.constant 9 : index
    %c0_107 = arith.constant 0 : index
    %c0_108 = arith.constant 0 : index
    %106 = vector.load %arg3[%c9, %c0_107, %c0_108] : memref<25x8x8xf32, #tpu.memory_space<vmem>>, vector<1x8x8xf32>
    %107 = vector.shape_cast %106 : vector<1x8x8xf32> to vector<8x8xf32>
    %cst_109 = arith.constant dense<0.000000e+00> : vector<8x210xf32>
    %108 = tpu.matmul %107, %105, %cst_109 {dimension_numbers = #tpu.dot_dimension_numbers<[1], [0], [0], [1], [0, 0, 1, 1], [], []>} : vector<8x8xf32>, vector<8x210xf32>, vector<8x210xf32> -> vector<8x210xf32>
    %109 = arith.addf %104, %108 : vector<8x210xf32>
    %c0_110 = arith.constant 0 : index
    %c36_111 = arith.constant 36 : index
    %110 = vector.load %arg11[%c0_110, %c36_111] : memref<8x324xf32, #tpu.memory_space<vmem>>, vector<8x210xf32>
    %c10 = arith.constant 10 : index
    %c0_112 = arith.constant 0 : index
    %c0_113 = arith.constant 0 : index
    %111 = vector.load %arg3[%c10, %c0_112, %c0_113] : memref<25x8x8xf32, #tpu.memory_space<vmem>>, vector<1x8x8xf32>
    %112 = vector.shape_cast %111 : vector<1x8x8xf32> to vector<8x8xf32>
    %cst_114 = arith.constant dense<0.000000e+00> : vector<8x210xf32>
    %113 = tpu.matmul %112, %110, %cst_114 {dimension_numbers = #tpu.dot_dimension_numbers<[1], [0], [0], [1], [0, 0, 1, 1], [], []>} : vector<8x8xf32>, vector<8x210xf32>, vector<8x210xf32> -> vector<8x210xf32>
    %114 = arith.addf %109, %113 : vector<8x210xf32>
    %c0_115 = arith.constant 0 : index
    %c37_116 = arith.constant 37 : index
    %115 = vector.load %arg11[%c0_115, %c37_116] : memref<8x324xf32, #tpu.memory_space<vmem>>, vector<8x210xf32>
    %c11 = arith.constant 11 : index
    %c0_117 = arith.constant 0 : index
    %c0_118 = arith.constant 0 : index
    %116 = vector.load %arg3[%c11, %c0_117, %c0_118] : memref<25x8x8xf32, #tpu.memory_space<vmem>>, vector<1x8x8xf32>
    %117 = vector.shape_cast %116 : vector<1x8x8xf32> to vector<8x8xf32>
    %cst_119 = arith.constant dense<0.000000e+00> : vector<8x210xf32>
    %118 = tpu.matmul %117, %115, %cst_119 {dimension_numbers = #tpu.dot_dimension_numbers<[1], [0], [0], [1], [0, 0, 1, 1], [], []>} : vector<8x8xf32>, vector<8x210xf32>, vector<8x210xf32> -> vector<8x210xf32>
    %119 = arith.addf %114, %118 : vector<8x210xf32>
    %c0_120 = arith.constant 0 : index
    %c38_121 = arith.constant 38 : index
    %120 = vector.load %arg11[%c0_120, %c38_121] : memref<8x324xf32, #tpu.memory_space<vmem>>, vector<8x210xf32>
    %c12 = arith.constant 12 : index
    %c0_122 = arith.constant 0 : index
    %c0_123 = arith.constant 0 : index
    %121 = vector.load %arg3[%c12, %c0_122, %c0_123] : memref<25x8x8xf32, #tpu.memory_space<vmem>>, vector<1x8x8xf32>
    %122 = vector.shape_cast %121 : vector<1x8x8xf32> to vector<8x8xf32>
    %cst_124 = arith.constant dense<0.000000e+00> : vector<8x210xf32>
    %123 = tpu.matmul %122, %120, %cst_124 {dimension_numbers = #tpu.dot_dimension_numbers<[1], [0], [0], [1], [0, 0, 1, 1], [], []>} : vector<8x8xf32>, vector<8x210xf32>, vector<8x210xf32> -> vector<8x210xf32>
    %124 = arith.addf %119, %123 : vector<8x210xf32>
    %c0_125 = arith.constant 0 : index
    %c39 = arith.constant 39 : index
    %125 = vector.load %arg11[%c0_125, %c39] : memref<8x324xf32, #tpu.memory_space<vmem>>, vector<8x210xf32>
    %c13 = arith.constant 13 : index
    %c0_126 = arith.constant 0 : index
    %c0_127 = arith.constant 0 : index
    %126 = vector.load %arg3[%c13, %c0_126, %c0_127] : memref<25x8x8xf32, #tpu.memory_space<vmem>>, vector<1x8x8xf32>
    %127 = vector.shape_cast %126 : vector<1x8x8xf32> to vector<8x8xf32>
    %cst_128 = arith.constant dense<0.000000e+00> : vector<8x210xf32>
    %128 = tpu.matmul %127, %125, %cst_128 {dimension_numbers = #tpu.dot_dimension_numbers<[1], [0], [0], [1], [0, 0, 1, 1], [], []>} : vector<8x8xf32>, vector<8x210xf32>, vector<8x210xf32> -> vector<8x210xf32>
    %129 = arith.addf %124, %128 : vector<8x210xf32>
    %c0_129 = arith.constant 0 : index
    %c40 = arith.constant 40 : index
    %130 = vector.load %arg11[%c0_129, %c40] : memref<8x324xf32, #tpu.memory_space<vmem>>, vector<8x210xf32>
    %c14 = arith.constant 14 : index
    %c0_130 = arith.constant 0 : index
    %c0_131 = arith.constant 0 : index
    %131 = vector.load %arg3[%c14, %c0_130, %c0_131] : memref<25x8x8xf32, #tpu.memory_space<vmem>>, vector<1x8x8xf32>
    %132 = vector.shape_cast %131 : vector<1x8x8xf32> to vector<8x8xf32>
    %cst_132 = arith.constant dense<0.000000e+00> : vector<8x210xf32>
    %133 = tpu.matmul %132, %130, %cst_132 {dimension_numbers = #tpu.dot_dimension_numbers<[1], [0], [0], [1], [0, 0, 1, 1], [], []>} : vector<8x8xf32>, vector<8x210xf32>, vector<8x210xf32> -> vector<8x210xf32>
    %134 = arith.addf %129, %133 : vector<8x210xf32>
    %c0_133 = arith.constant 0 : index
    %c54 = arith.constant 54 : index
    %135 = vector.load %arg11[%c0_133, %c54] : memref<8x324xf32, #tpu.memory_space<vmem>>, vector<8x210xf32>
    %c15 = arith.constant 15 : index
    %c0_134 = arith.constant 0 : index
    %c0_135 = arith.constant 0 : index
    %136 = vector.load %arg3[%c15, %c0_134, %c0_135] : memref<25x8x8xf32, #tpu.memory_space<vmem>>, vector<1x8x8xf32>
    %137 = vector.shape_cast %136 : vector<1x8x8xf32> to vector<8x8xf32>
    %cst_136 = arith.constant dense<0.000000e+00> : vector<8x210xf32>
    %138 = tpu.matmul %137, %135, %cst_136 {dimension_numbers = #tpu.dot_dimension_numbers<[1], [0], [0], [1], [0, 0, 1, 1], [], []>} : vector<8x8xf32>, vector<8x210xf32>, vector<8x210xf32> -> vector<8x210xf32>
    %139 = arith.addf %134, %138 : vector<8x210xf32>
    %c0_137 = arith.constant 0 : index
    %c55 = arith.constant 55 : index
    %140 = vector.load %arg11[%c0_137, %c55] : memref<8x324xf32, #tpu.memory_space<vmem>>, vector<8x210xf32>
    %c16 = arith.constant 16 : index
    %c0_138 = arith.constant 0 : index
    %c0_139 = arith.constant 0 : index
    %141 = vector.load %arg3[%c16, %c0_138, %c0_139] : memref<25x8x8xf32, #tpu.memory_space<vmem>>, vector<1x8x8xf32>
    %142 = vector.shape_cast %141 : vector<1x8x8xf32> to vector<8x8xf32>
    %cst_140 = arith.constant dense<0.000000e+00> : vector<8x210xf32>
    %143 = tpu.matmul %142, %140, %cst_140 {dimension_numbers = #tpu.dot_dimension_numbers<[1], [0], [0], [1], [0, 0, 1, 1], [], []>} : vector<8x8xf32>, vector<8x210xf32>, vector<8x210xf32> -> vector<8x210xf32>
    %144 = arith.addf %139, %143 : vector<8x210xf32>
    %c0_141 = arith.constant 0 : index
    %c56 = arith.constant 56 : index
    %145 = vector.load %arg11[%c0_141, %c56] : memref<8x324xf32, #tpu.memory_space<vmem>>, vector<8x210xf32>
    %c17 = arith.constant 17 : index
    %c0_142 = arith.constant 0 : index
    %c0_143 = arith.constant 0 : index
    %146 = vector.load %arg3[%c17, %c0_142, %c0_143] : memref<25x8x8xf32, #tpu.memory_space<vmem>>, vector<1x8x8xf32>
    %147 = vector.shape_cast %146 : vector<1x8x8xf32> to vector<8x8xf32>
    %cst_144 = arith.constant dense<0.000000e+00> : vector<8x210xf32>
    %148 = tpu.matmul %147, %145, %cst_144 {dimension_numbers = #tpu.dot_dimension_numbers<[1], [0], [0], [1], [0, 0, 1, 1], [], []>} : vector<8x8xf32>, vector<8x210xf32>, vector<8x210xf32> -> vector<8x210xf32>
    %149 = arith.addf %144, %148 : vector<8x210xf32>
    %c0_145 = arith.constant 0 : index
    %c57 = arith.constant 57 : index
    %150 = vector.load %arg11[%c0_145, %c57] : memref<8x324xf32, #tpu.memory_space<vmem>>, vector<8x210xf32>
    %c18_146 = arith.constant 18 : index
    %c0_147 = arith.constant 0 : index
    %c0_148 = arith.constant 0 : index
    %151 = vector.load %arg3[%c18_146, %c0_147, %c0_148] : memref<25x8x8xf32, #tpu.memory_space<vmem>>, vector<1x8x8xf32>
    %152 = vector.shape_cast %151 : vector<1x8x8xf32> to vector<8x8xf32>
    %cst_149 = arith.constant dense<0.000000e+00> : vector<8x210xf32>
    %153 = tpu.matmul %152, %150, %cst_149 {dimension_numbers = #tpu.dot_dimension_numbers<[1], [0], [0], [1], [0, 0, 1, 1], [], []>} : vector<8x8xf32>, vector<8x210xf32>, vector<8x210xf32> -> vector<8x210xf32>
    %154 = arith.addf %149, %153 : vector<8x210xf32>
    %c0_150 = arith.constant 0 : index
    %c58 = arith.constant 58 : index
    %155 = vector.load %arg11[%c0_150, %c58] : memref<8x324xf32, #tpu.memory_space<vmem>>, vector<8x210xf32>
    %c19_151 = arith.constant 19 : index
    %c0_152 = arith.constant 0 : index
    %c0_153 = arith.constant 0 : index
    %156 = vector.load %arg3[%c19_151, %c0_152, %c0_153] : memref<25x8x8xf32, #tpu.memory_space<vmem>>, vector<1x8x8xf32>
    %157 = vector.shape_cast %156 : vector<1x8x8xf32> to vector<8x8xf32>
    %cst_154 = arith.constant dense<0.000000e+00> : vector<8x210xf32>
    %158 = tpu.matmul %157, %155, %cst_154 {dimension_numbers = #tpu.dot_dimension_numbers<[1], [0], [0], [1], [0, 0, 1, 1], [], []>} : vector<8x8xf32>, vector<8x210xf32>, vector<8x210xf32> -> vector<8x210xf32>
    %159 = arith.addf %154, %158 : vector<8x210xf32>
    %c0_155 = arith.constant 0 : index
    %c72 = arith.constant 72 : index
    %160 = vector.load %arg11[%c0_155, %c72] : memref<8x324xf32, #tpu.memory_space<vmem>>, vector<8x210xf32>
    %c20_156 = arith.constant 20 : index
    %c0_157 = arith.constant 0 : index
    %c0_158 = arith.constant 0 : index
    %161 = vector.load %arg3[%c20_156, %c0_157, %c0_158] : memref<25x8x8xf32, #tpu.memory_space<vmem>>, vector<1x8x8xf32>
    %162 = vector.shape_cast %161 : vector<1x8x8xf32> to vector<8x8xf32>
    %cst_159 = arith.constant dense<0.000000e+00> : vector<8x210xf32>
    %163 = tpu.matmul %162, %160, %cst_159 {dimension_numbers = #tpu.dot_dimension_numbers<[1], [0], [0], [1], [0, 0, 1, 1], [], []>} : vector<8x8xf32>, vector<8x210xf32>, vector<8x210xf32> -> vector<8x210xf32>
    %164 = arith.addf %159, %163 : vector<8x210xf32>
    %c0_160 = arith.constant 0 : index
    %c73 = arith.constant 73 : index
    %165 = vector.load %arg11[%c0_160, %c73] : memref<8x324xf32, #tpu.memory_space<vmem>>, vector<8x210xf32>
    %c21_161 = arith.constant 21 : index
    %c0_162 = arith.constant 0 : index
    %c0_163 = arith.constant 0 : index
    %166 = vector.load %arg3[%c21_161, %c0_162, %c0_163] : memref<25x8x8xf32, #tpu.memory_space<vmem>>, vector<1x8x8xf32>
    %167 = vector.shape_cast %166 : vector<1x8x8xf32> to vector<8x8xf32>
    %cst_164 = arith.constant dense<0.000000e+00> : vector<8x210xf32>
    %168 = tpu.matmul %167, %165, %cst_164 {dimension_numbers = #tpu.dot_dimension_numbers<[1], [0], [0], [1], [0, 0, 1, 1], [], []>} : vector<8x8xf32>, vector<8x210xf32>, vector<8x210xf32> -> vector<8x210xf32>
    %169 = arith.addf %164, %168 : vector<8x210xf32>
    %c0_165 = arith.constant 0 : index
    %c74 = arith.constant 74 : index
    %170 = vector.load %arg11[%c0_165, %c74] : memref<8x324xf32, #tpu.memory_space<vmem>>, vector<8x210xf32>
    %c22_166 = arith.constant 22 : index
    %c0_167 = arith.constant 0 : index
    %c0_168 = arith.constant 0 : index
    %171 = vector.load %arg3[%c22_166, %c0_167, %c0_168] : memref<25x8x8xf32, #tpu.memory_space<vmem>>, vector<1x8x8xf32>
    %172 = vector.shape_cast %171 : vector<1x8x8xf32> to vector<8x8xf32>
    %cst_169 = arith.constant dense<0.000000e+00> : vector<8x210xf32>
    %173 = tpu.matmul %172, %170, %cst_169 {dimension_numbers = #tpu.dot_dimension_numbers<[1], [0], [0], [1], [0, 0, 1, 1], [], []>} : vector<8x8xf32>, vector<8x210xf32>, vector<8x210xf32> -> vector<8x210xf32>
    %174 = arith.addf %169, %173 : vector<8x210xf32>
    %c0_170 = arith.constant 0 : index
    %c75 = arith.constant 75 : index
    %175 = vector.load %arg11[%c0_170, %c75] : memref<8x324xf32, #tpu.memory_space<vmem>>, vector<8x210xf32>
    %c23 = arith.constant 23 : index
    %c0_171 = arith.constant 0 : index
    %c0_172 = arith.constant 0 : index
    %176 = vector.load %arg3[%c23, %c0_171, %c0_172] : memref<25x8x8xf32, #tpu.memory_space<vmem>>, vector<1x8x8xf32>
    %177 = vector.shape_cast %176 : vector<1x8x8xf32> to vector<8x8xf32>
    %cst_173 = arith.constant dense<0.000000e+00> : vector<8x210xf32>
    %178 = tpu.matmul %177, %175, %cst_173 {dimension_numbers = #tpu.dot_dimension_numbers<[1], [0], [0], [1], [0, 0, 1, 1], [], []>} : vector<8x8xf32>, vector<8x210xf32>, vector<8x210xf32> -> vector<8x210xf32>
    %179 = arith.addf %174, %178 : vector<8x210xf32>
    %c0_174 = arith.constant 0 : index
    %c76 = arith.constant 76 : index
    %180 = vector.load %arg11[%c0_174, %c76] : memref<8x324xf32, #tpu.memory_space<vmem>>, vector<8x210xf32>
    %c24 = arith.constant 24 : index
    %c0_175 = arith.constant 0 : index
    %c0_176 = arith.constant 0 : index
    %181 = vector.load %arg3[%c24, %c0_175, %c0_176] : memref<25x8x8xf32, #tpu.memory_space<vmem>>, vector<1x8x8xf32>
    %182 = vector.shape_cast %181 : vector<1x8x8xf32> to vector<8x8xf32>
    %cst_177 = arith.constant dense<0.000000e+00> : vector<8x210xf32>
    %183 = tpu.matmul %182, %180, %cst_177 {dimension_numbers = #tpu.dot_dimension_numbers<[1], [0], [0], [1], [0, 0, 1, 1], [], []>} : vector<8x8xf32>, vector<8x210xf32>, vector<8x210xf32> -> vector<8x210xf32>
    %184 = arith.addf %179, %183 : vector<8x210xf32>
    %c0_178 = arith.constant 0 : index
    %c0_179 = arith.constant 0 : index
    %185 = vector.load %arg7[%c0_178, %c0_179] : memref<8x1xf32, #tpu.memory_space<vmem>>, vector<8x1xf32>
    %186 = vector.broadcast %185 : vector<8x1xf32> to vector<8x210xf32>
    %187 = arith.addf %184, %186 : vector<8x210xf32>
    %c0_180 = arith.constant 0 : index
    %c0_181 = arith.constant 0 : index
    %188 = vector.load %arg12[%c0_180, %c0_181] : memref<8x324xf32, #tpu.memory_space<vmem>>, vector<8x210xf32>
    tpu.vector_store %arg12[%c0_180, %c0_181], %187 {strides = array<i32>} : memref<8x324xf32, #tpu.memory_space<vmem>>, vector<8x210xf32>,
    %cst_182 = arith.constant 0.000000e+00 : f32
    %189 = vector.broadcast %cst_182 : f32 to vector<8x324xf32>
    %c0_183 = arith.constant 0 : index
    %c0_184 = arith.constant 0 : index
    %190 = vector.load %arg13[%c0_183, %c0_184] : memref<8x324xf32, #tpu.memory_space<vmem>>, vector<8x324xf32>
    tpu.vector_store %arg13[%c0_183, %c0_184], %189 {strides = array<i32>} : memref<8x324xf32, #tpu.memory_space<vmem>>, vector<8x324xf32>,
    %cst_185 = arith.constant 0.000000e+00 : f32
    %191 = vector.broadcast %cst_185 : f32 to vector<8x172xf32>
    %c0_186 = arith.constant 0 : index
    %c0_187 = arith.constant 0 : index
    %192 = vector.load %arg12[%c0_186, %c0_187] : memref<8x324xf32, #tpu.memory_space<vmem>>, vector<8x172xf32>
    %c0_188 = arith.constant 0 : index
    %c0_189 = arith.constant 0 : index
    %c0_190 = arith.constant 0 : index
    %193 = vector.load %arg4[%c0_188, %c0_189, %c0_190] : memref<9x8x8xf32, #tpu.memory_space<vmem>>, vector<1x8x8xf32>
    %194 = vector.shape_cast %193 : vector<1x8x8xf32> to vector<8x8xf32>
    %cst_191 = arith.constant dense<0.000000e+00> : vector<8x172xf32>
    %195 = tpu.matmul %194, %192, %cst_191 {dimension_numbers = #tpu.dot_dimension_numbers<[1], [0], [0], [1], [0, 0, 1, 1], [], []>} : vector<8x8xf32>, vector<8x172xf32>, vector<8x172xf32> -> vector<8x172xf32>
    %196 = arith.addf %191, %195 : vector<8x172xf32>
    %c0_192 = arith.constant 0 : index
    %c1_193 = arith.constant 1 : index
    %197 = vector.load %arg12[%c0_192, %c1_193] : memref<8x324xf32, #tpu.memory_space<vmem>>, vector<8x172xf32>
    %c1_194 = arith.constant 1 : index
    %c0_195 = arith.constant 0 : index
    %c0_196 = arith.constant 0 : index
    %198 = vector.load %arg4[%c1_194, %c0_195, %c0_196] : memref<9x8x8xf32, #tpu.memory_space<vmem>>, vector<1x8x8xf32>
    %199 = vector.shape_cast %198 : vector<1x8x8xf32> to vector<8x8xf32>
    %cst_197 = arith.constant dense<0.000000e+00> : vector<8x172xf32>
    %200 = tpu.matmul %199, %197, %cst_197 {dimension_numbers = #tpu.dot_dimension_numbers<[1], [0], [0], [1], [0, 0, 1, 1], [], []>} : vector<8x8xf32>, vector<8x172xf32>, vector<8x172xf32> -> vector<8x172xf32>
    %201 = arith.addf %196, %200 : vector<8x172xf32>
    %c0_198 = arith.constant 0 : index
    %c2_199 = arith.constant 2 : index
    %202 = vector.load %arg12[%c0_198, %c2_199] : memref<8x324xf32, #tpu.memory_space<vmem>>, vector<8x172xf32>
    %c2_200 = arith.constant 2 : index
    %c0_201 = arith.constant 0 : index
    %c0_202 = arith.constant 0 : index
    %203 = vector.load %arg4[%c2_200, %c0_201, %c0_202] : memref<9x8x8xf32, #tpu.memory_space<vmem>>, vector<1x8x8xf32>
    %204 = vector.shape_cast %203 : vector<1x8x8xf32> to vector<8x8xf32>
    %cst_203 = arith.constant dense<0.000000e+00> : vector<8x172xf32>
    %205 = tpu.matmul %204, %202, %cst_203 {dimension_numbers = #tpu.dot_dimension_numbers<[1], [0], [0], [1], [0, 0, 1, 1], [], []>} : vector<8x8xf32>, vector<8x172xf32>, vector<8x172xf32> -> vector<8x172xf32>
    %206 = arith.addf %201, %205 : vector<8x172xf32>
    %c0_204 = arith.constant 0 : index
    %c18_205 = arith.constant 18 : index
    %207 = vector.load %arg12[%c0_204, %c18_205] : memref<8x324xf32, #tpu.memory_space<vmem>>, vector<8x172xf32>
    %c3_206 = arith.constant 3 : index
    %c0_207 = arith.constant 0 : index
    %c0_208 = arith.constant 0 : index
    %208 = vector.load %arg4[%c3_206, %c0_207, %c0_208] : memref<9x8x8xf32, #tpu.memory_space<vmem>>, vector<1x8x8xf32>
    %209 = vector.shape_cast %208 : vector<1x8x8xf32> to vector<8x8xf32>
    %cst_209 = arith.constant dense<0.000000e+00> : vector<8x172xf32>
    %210 = tpu.matmul %209, %207, %cst_209 {dimension_numbers = #tpu.dot_dimension_numbers<[1], [0], [0], [1], [0, 0, 1, 1], [], []>} : vector<8x8xf32>, vector<8x172xf32>, vector<8x172xf32> -> vector<8x172xf32>
    %211 = arith.addf %206, %210 : vector<8x172xf32>
    %c0_210 = arith.constant 0 : index
    %c19_211 = arith.constant 19 : index
    %212 = vector.load %arg12[%c0_210, %c19_211] : memref<8x324xf32, #tpu.memory_space<vmem>>, vector<8x172xf32>
    %c4_212 = arith.constant 4 : index
    %c0_213 = arith.constant 0 : index
    %c0_214 = arith.constant 0 : index
    %213 = vector.load %arg4[%c4_212, %c0_213, %c0_214] : memref<9x8x8xf32, #tpu.memory_space<vmem>>, vector<1x8x8xf32>
    %214 = vector.shape_cast %213 : vector<1x8x8xf32> to vector<8x8xf32>
    %cst_215 = arith.constant dense<0.000000e+00> : vector<8x172xf32>
    %215 = tpu.matmul %214, %212, %cst_215 {dimension_numbers = #tpu.dot_dimension_numbers<[1], [0], [0], [1], [0, 0, 1, 1], [], []>} : vector<8x8xf32>, vector<8x172xf32>, vector<8x172xf32> -> vector<8x172xf32>
    %216 = arith.addf %211, %215 : vector<8x172xf32>
    %c0_216 = arith.constant 0 : index
    %c20_217 = arith.constant 20 : index
    %217 = vector.load %arg12[%c0_216, %c20_217] : memref<8x324xf32, #tpu.memory_space<vmem>>, vector<8x172xf32>
    %c5_218 = arith.constant 5 : index
    %c0_219 = arith.constant 0 : index
    %c0_220 = arith.constant 0 : index
    %218 = vector.load %arg4[%c5_218, %c0_219, %c0_220] : memref<9x8x8xf32, #tpu.memory_space<vmem>>, vector<1x8x8xf32>
    %219 = vector.shape_cast %218 : vector<1x8x8xf32> to vector<8x8xf32>
    %cst_221 = arith.constant dense<0.000000e+00> : vector<8x172xf32>
    %220 = tpu.matmul %219, %217, %cst_221 {dimension_numbers = #tpu.dot_dimension_numbers<[1], [0], [0], [1], [0, 0, 1, 1], [], []>} : vector<8x8xf32>, vector<8x172xf32>, vector<8x172xf32> -> vector<8x172xf32>
    %221 = arith.addf %216, %220 : vector<8x172xf32>
    %c0_222 = arith.constant 0 : index
    %c36_223 = arith.constant 36 : index
    %222 = vector.load %arg12[%c0_222, %c36_223] : memref<8x324xf32, #tpu.memory_space<vmem>>, vector<8x172xf32>
    %c6_224 = arith.constant 6 : index
    %c0_225 = arith.constant 0 : index
    %c0_226 = arith.constant 0 : index
    %223 = vector.load %arg4[%c6_224, %c0_225, %c0_226] : memref<9x8x8xf32, #tpu.memory_space<vmem>>, vector<1x8x8xf32>
    %224 = vector.shape_cast %223 : vector<1x8x8xf32> to vector<8x8xf32>
    %cst_227 = arith.constant dense<0.000000e+00> : vector<8x172xf32>
    %225 = tpu.matmul %224, %222, %cst_227 {dimension_numbers = #tpu.dot_dimension_numbers<[1], [0], [0], [1], [0, 0, 1, 1], [], []>} : vector<8x8xf32>, vector<8x172xf32>, vector<8x172xf32> -> vector<8x172xf32>
    %226 = arith.addf %221, %225 : vector<8x172xf32>
    %c0_228 = arith.constant 0 : index
    %c37_229 = arith.constant 37 : index
    %227 = vector.load %arg12[%c0_228, %c37_229] : memref<8x324xf32, #tpu.memory_space<vmem>>, vector<8x172xf32>
    %c7_230 = arith.constant 7 : index
    %c0_231 = arith.constant 0 : index
    %c0_232 = arith.constant 0 : index
    %228 = vector.load %arg4[%c7_230, %c0_231, %c0_232] : memref<9x8x8xf32, #tpu.memory_space<vmem>>, vector<1x8x8xf32>
    %229 = vector.shape_cast %228 : vector<1x8x8xf32> to vector<8x8xf32>
    %cst_233 = arith.constant dense<0.000000e+00> : vector<8x172xf32>
    %230 = tpu.matmul %229, %227, %cst_233 {dimension_numbers = #tpu.dot_dimension_numbers<[1], [0], [0], [1], [0, 0, 1, 1], [], []>} : vector<8x8xf32>, vector<8x172xf32>, vector<8x172xf32> -> vector<8x172xf32>
    %231 = arith.addf %226, %230 : vector<8x172xf32>
    %c0_234 = arith.constant 0 : index
    %c38_235 = arith.constant 38 : index
    %232 = vector.load %arg12[%c0_234, %c38_235] : memref<8x324xf32, #tpu.memory_space<vmem>>, vector<8x172xf32>
    %c8_236 = arith.constant 8 : index
    %c0_237 = arith.constant 0 : index
    %c0_238 = arith.constant 0 : index
    %233 = vector.load %arg4[%c8_236, %c0_237, %c0_238] : memref<9x8x8xf32, #tpu.memory_space<vmem>>, vector<1x8x8xf32>
    %234 = vector.shape_cast %233 : vector<1x8x8xf32> to vector<8x8xf32>
    %cst_239 = arith.constant dense<0.000000e+00> : vector<8x172xf32>
    %235 = tpu.matmul %234, %232, %cst_239 {dimension_numbers = #tpu.dot_dimension_numbers<[1], [0], [0], [1], [0, 0, 1, 1], [], []>} : vector<8x8xf32>, vector<8x172xf32>, vector<8x172xf32> -> vector<8x172xf32>
    %236 = arith.addf %231, %235 : vector<8x172xf32>
    %c0_240 = arith.constant 0 : index
    %c0_241 = arith.constant 0 : index
    %237 = vector.load %arg8[%c0_240, %c0_241] : memref<8x1xf32, #tpu.memory_space<vmem>>, vector<8x1xf32>
    %238 = vector.broadcast %237 : vector<8x1xf32> to vector<8x172xf32>
    %239 = arith.addf %236, %238 : vector<8x172xf32>
    %240 = vector.extract_strided_slice %239 {offsets = [0, 0], sizes = [8, 10], strides = [1, 1]} : vector<8x172xf32> to vector<8x10xf32>
    %c0_242 = arith.constant 0 : index
    %c19_243 = arith.constant 19 : index
    %241 = vector.load %arg13[%c0_242, %c19_243] : memref<8x324xf32, #tpu.memory_space<vmem>>, vector<8x10xf32>
    tpu.vector_store %arg13[%c0_242, %c19_243], %240 {strides = array<i32>} : memref<8x324xf32, #tpu.memory_space<vmem>>, vector<8x10xf32>,
    %242 = vector.extract_strided_slice %239 {offsets = [0, 18], sizes = [8, 10], strides = [1, 1]} : vector<8x172xf32> to vector<8x10xf32>
    %c0_244 = arith.constant 0 : index
    %c37_245 = arith.constant 37 : index
    %243 = vector.load %arg13[%c0_244, %c37_245] : memref<8x324xf32, #tpu.memory_space<vmem>>, vector<8x10xf32>
    tpu.vector_store %arg13[%c0_244, %c37_245], %242 {strides = array<i32>} : memref<8x324xf32, #tpu.memory_space<vmem>>, vector<8x10xf32>,
    %244 = vector.extract_strided_slice %239 {offsets = [0, 36], sizes = [8, 10], strides = [1, 1]} : vector<8x172xf32> to vector<8x10xf32>
    %c0_246 = arith.constant 0 : index
    %c55_247 = arith.constant 55 : index
    %245 = vector.load %arg13[%c0_246, %c55_247] : memref<8x324xf32, #tpu.memory_space<vmem>>, vector<8x10xf32>
    tpu.vector_store %arg13[%c0_246, %c55_247], %244 {strides = array<i32>} : memref<8x324xf32, #tpu.memory_space<vmem>>, vector<8x10xf32>,
    %246 = vector.extract_strided_slice %239 {offsets = [0, 54], sizes = [8, 10], strides = [1, 1]} : vector<8x172xf32> to vector<8x10xf32>
    %c0_248 = arith.constant 0 : index
    %c73_249 = arith.constant 73 : index
    %247 = vector.load %arg13[%c0_248, %c73_249] : memref<8x324xf32, #tpu.memory_space<vmem>>, vector<8x10xf32>
    tpu.vector_store %arg13[%c0_248, %c73_249], %246 {strides = array<i32>} : memref<8x324xf32, #tpu.memory_space<vmem>>, vector<8x10xf32>,
    %248 = vector.extract_strided_slice %239 {offsets = [0, 72], sizes = [8, 10], strides = [1, 1]} : vector<8x172xf32> to vector<8x10xf32>
    %c0_250 = arith.constant 0 : index
    %c91 = arith.constant 91 : index
    %249 = vector.load %arg13[%c0_250, %c91] : memref<8x324xf32, #tpu.memory_space<vmem>>, vector<8x10xf32>
    tpu.vector_store %arg13[%c0_250, %c91], %248 {strides = array<i32>} : memref<8x324xf32, #tpu.memory_space<vmem>>, vector<8x10xf32>,
    %250 = vector.extract_strided_slice %239 {offsets = [0, 90], sizes = [8, 10], strides = [1, 1]} : vector<8x172xf32> to vector<8x10xf32>
    %c0_251 = arith.constant 0 : index
    %c109 = arith.constant 109 : index
    %251 = vector.load %arg13[%c0_251, %c109] : memref<8x324xf32, #tpu.memory_space<vmem>>, vector<8x10xf32>
    tpu.vector_store %arg13[%c0_251, %c109], %250 {strides = array<i32>} : memref<8x324xf32, #tpu.memory_space<vmem>>, vector<8x10xf32>,
    %252 = vector.extract_strided_slice %239 {offsets = [0, 108], sizes = [8, 10], strides = [1, 1]} : vector<8x172xf32> to vector<8x10xf32>
    %c0_252 = arith.constant 0 : index
    %c127 = arith.constant 127 : index
    %253 = vector.load %arg13[%c0_252, %c127] : memref<8x324xf32, #tpu.memory_space<vmem>>, vector<8x10xf32>
    tpu.vector_store %arg13[%c0_252, %c127], %252 {strides = array<i32>} : memref<8x324xf32, #tpu.memory_space<vmem>>, vector<8x10xf32>,
    %254 = vector.extract_strided_slice %239 {offsets = [0, 126], sizes = [8, 10], strides = [1, 1]} : vector<8x172xf32> to vector<8x10xf32>
    %c0_253 = arith.constant 0 : index
    %c145 = arith.constant 145 : index
    %255 = vector.load %arg13[%c0_253, %c145] : memref<8x324xf32, #tpu.memory_space<vmem>>, vector<8x10xf32>
    tpu.vector_store %arg13[%c0_253, %c145], %254 {strides = array<i32>} : memref<8x324xf32, #tpu.memory_space<vmem>>, vector<8x10xf32>,
    %256 = vector.extract_strided_slice %239 {offsets = [0, 144], sizes = [8, 10], strides = [1, 1]} : vector<8x172xf32> to vector<8x10xf32>
    %c0_254 = arith.constant 0 : index
    %c163 = arith.constant 163 : index
    %257 = vector.load %arg13[%c0_254, %c163] : memref<8x324xf32, #tpu.memory_space<vmem>>, vector<8x10xf32>
    tpu.vector_store %arg13[%c0_254, %c163], %256 {strides = array<i32>} : memref<8x324xf32, #tpu.memory_space<vmem>>, vector<8x10xf32>,
    %258 = vector.extract_strided_slice %239 {offsets = [0, 162], sizes = [8, 10], strides = [1, 1]} : vector<8x172xf32> to vector<8x10xf32>
    %c0_255 = arith.constant 0 : index
    %c181 = arith.constant 181 : index
    %259 = vector.load %arg13[%c0_255, %c181] : memref<8x324xf32, #tpu.memory_space<vmem>>, vector<8x10xf32>
    tpu.vector_store %arg13[%c0_255, %c181], %258 {strides = array<i32>} : memref<8x324xf32, #tpu.memory_space<vmem>>, vector<8x10xf32>,
    %cst_256 = arith.constant 0.000000e+00 : f32
    %260 = vector.broadcast %cst_256 : f32 to vector<3x172xf32>
    %c0_257 = arith.constant 0 : index
    %c0_258 = arith.constant 0 : index
    %261 = vector.load %arg13[%c0_257, %c0_258] : memref<8x324xf32, #tpu.memory_space<vmem>>, vector<8x172xf32>
    %c0_259 = arith.constant 0 : index
    %c0_260 = arith.constant 0 : index
    %c0_261 = arith.constant 0 : index
    %262 = vector.load %arg5[%c0_259, %c0_260, %c0_261] : memref<9x3x8xf32, #tpu.memory_space<vmem>>, vector<1x3x8xf32>
    %263 = vector.shape_cast %262 : vector<1x3x8xf32> to vector<3x8xf32>
    %cst_262 = arith.constant dense<0.000000e+00> : vector<3x172xf32>
    %264 = tpu.matmul %263, %261, %cst_262 {dimension_numbers = #tpu.dot_dimension_numbers<[1], [0], [0], [1], [0, 0, 1, 1], [], []>} : vector<3x8xf32>, vector<8x172xf32>, vector<3x172xf32> -> vector<3x172xf32>
    %265 = arith.addf %260, %264 : vector<3x172xf32>
    %c0_263 = arith.constant 0 : index
    %c1_264 = arith.constant 1 : index
    %266 = vector.load %arg13[%c0_263, %c1_264] : memref<8x324xf32, #tpu.memory_space<vmem>>, vector<8x172xf32>
    %c1_265 = arith.constant 1 : index
    %c0_266 = arith.constant 0 : index
    %c0_267 = arith.constant 0 : index
    %267 = vector.load %arg5[%c1_265, %c0_266, %c0_267] : memref<9x3x8xf32, #tpu.memory_space<vmem>>, vector<1x3x8xf32>
    %268 = vector.shape_cast %267 : vector<1x3x8xf32> to vector<3x8xf32>
    %cst_268 = arith.constant dense<0.000000e+00> : vector<3x172xf32>
    %269 = tpu.matmul %268, %266, %cst_268 {dimension_numbers = #tpu.dot_dimension_numbers<[1], [0], [0], [1], [0, 0, 1, 1], [], []>} : vector<3x8xf32>, vector<8x172xf32>, vector<3x172xf32> -> vector<3x172xf32>
    %270 = arith.addf %265, %269 : vector<3x172xf32>
    %c0_269 = arith.constant 0 : index
    %c2_270 = arith.constant 2 : index
    %271 = vector.load %arg13[%c0_269, %c2_270] : memref<8x324xf32, #tpu.memory_space<vmem>>, vector<8x172xf32>
    %c2_271 = arith.constant 2 : index
    %c0_272 = arith.constant 0 : index
    %c0_273 = arith.constant 0 : index
    %272 = vector.load %arg5[%c2_271, %c0_272, %c0_273] : memref<9x3x8xf32, #tpu.memory_space<vmem>>, vector<1x3x8xf32>
    %273 = vector.shape_cast %272 : vector<1x3x8xf32> to vector<3x8xf32>
    %cst_274 = arith.constant dense<0.000000e+00> : vector<3x172xf32>
    %274 = tpu.matmul %273, %271, %cst_274 {dimension_numbers = #tpu.dot_dimension_numbers<[1], [0], [0], [1], [0, 0, 1, 1], [], []>} : vector<3x8xf32>, vector<8x172xf32>, vector<3x172xf32> -> vector<3x172xf32>
    %275 = arith.addf %270, %274 : vector<3x172xf32>
    %c0_275 = arith.constant 0 : index
    %c18_276 = arith.constant 18 : index
    %276 = vector.load %arg13[%c0_275, %c18_276] : memref<8x324xf32, #tpu.memory_space<vmem>>, vector<8x172xf32>
    %c3_277 = arith.constant 3 : index
    %c0_278 = arith.constant 0 : index
    %c0_279 = arith.constant 0 : index
    %277 = vector.load %arg5[%c3_277, %c0_278, %c0_279] : memref<9x3x8xf32, #tpu.memory_space<vmem>>, vector<1x3x8xf32>
    %278 = vector.shape_cast %277 : vector<1x3x8xf32> to vector<3x8xf32>
    %cst_280 = arith.constant dense<0.000000e+00> : vector<3x172xf32>
    %279 = tpu.matmul %278, %276, %cst_280 {dimension_numbers = #tpu.dot_dimension_numbers<[1], [0], [0], [1], [0, 0, 1, 1], [], []>} : vector<3x8xf32>, vector<8x172xf32>, vector<3x172xf32> -> vector<3x172xf32>
    %280 = arith.addf %275, %279 : vector<3x172xf32>
    %c0_281 = arith.constant 0 : index
    %c19_282 = arith.constant 19 : index
    %281 = vector.load %arg13[%c0_281, %c19_282] : memref<8x324xf32, #tpu.memory_space<vmem>>, vector<8x172xf32>
    %c4_283 = arith.constant 4 : index
    %c0_284 = arith.constant 0 : index
    %c0_285 = arith.constant 0 : index
    %282 = vector.load %arg5[%c4_283, %c0_284, %c0_285] : memref<9x3x8xf32, #tpu.memory_space<vmem>>, vector<1x3x8xf32>
    %283 = vector.shape_cast %282 : vector<1x3x8xf32> to vector<3x8xf32>
    %cst_286 = arith.constant dense<0.000000e+00> : vector<3x172xf32>
    %284 = tpu.matmul %283, %281, %cst_286 {dimension_numbers = #tpu.dot_dimension_numbers<[1], [0], [0], [1], [0, 0, 1, 1], [], []>} : vector<3x8xf32>, vector<8x172xf32>, vector<3x172xf32> -> vector<3x172xf32>
    %285 = arith.addf %280, %284 : vector<3x172xf32>
    %c0_287 = arith.constant 0 : index
    %c20_288 = arith.constant 20 : index
    %286 = vector.load %arg13[%c0_287, %c20_288] : memref<8x324xf32, #tpu.memory_space<vmem>>, vector<8x172xf32>
    %c5_289 = arith.constant 5 : index
    %c0_290 = arith.constant 0 : index
    %c0_291 = arith.constant 0 : index
    %287 = vector.load %arg5[%c5_289, %c0_290, %c0_291] : memref<9x3x8xf32, #tpu.memory_space<vmem>>, vector<1x3x8xf32>
    %288 = vector.shape_cast %287 : vector<1x3x8xf32> to vector<3x8xf32>
    %cst_292 = arith.constant dense<0.000000e+00> : vector<3x172xf32>
    %289 = tpu.matmul %288, %286, %cst_292 {dimension_numbers = #tpu.dot_dimension_numbers<[1], [0], [0], [1], [0, 0, 1, 1], [], []>} : vector<3x8xf32>, vector<8x172xf32>, vector<3x172xf32> -> vector<3x172xf32>
    %290 = arith.addf %285, %289 : vector<3x172xf32>
    %c0_293 = arith.constant 0 : index
    %c36_294 = arith.constant 36 : index
    %291 = vector.load %arg13[%c0_293, %c36_294] : memref<8x324xf32, #tpu.memory_space<vmem>>, vector<8x172xf32>
    %c6_295 = arith.constant 6 : index
    %c0_296 = arith.constant 0 : index
    %c0_297 = arith.constant 0 : index
    %292 = vector.load %arg5[%c6_295, %c0_296, %c0_297] : memref<9x3x8xf32, #tpu.memory_space<vmem>>, vector<1x3x8xf32>
    %293 = vector.shape_cast %292 : vector<1x3x8xf32> to vector<3x8xf32>
    %cst_298 = arith.constant dense<0.000000e+00> : vector<3x172xf32>
    %294 = tpu.matmul %293, %291, %cst_298 {dimension_numbers = #tpu.dot_dimension_numbers<[1], [0], [0], [1], [0, 0, 1, 1], [], []>} : vector<3x8xf32>, vector<8x172xf32>, vector<3x172xf32> -> vector<3x172xf32>
    %295 = arith.addf %290, %294 : vector<3x172xf32>
    %c0_299 = arith.constant 0 : index
    %c37_300 = arith.constant 37 : index
    %296 = vector.load %arg13[%c0_299, %c37_300] : memref<8x324xf32, #tpu.memory_space<vmem>>, vector<8x172xf32>
    %c7_301 = arith.constant 7 : index
    %c0_302 = arith.constant 0 : index
    %c0_303 = arith.constant 0 : index
    %297 = vector.load %arg5[%c7_301, %c0_302, %c0_303] : memref<9x3x8xf32, #tpu.memory_space<vmem>>, vector<1x3x8xf32>
    %298 = vector.shape_cast %297 : vector<1x3x8xf32> to vector<3x8xf32>
    %cst_304 = arith.constant dense<0.000000e+00> : vector<3x172xf32>
    %299 = tpu.matmul %298, %296, %cst_304 {dimension_numbers = #tpu.dot_dimension_numbers<[1], [0], [0], [1], [0, 0, 1, 1], [], []>} : vector<3x8xf32>, vector<8x172xf32>, vector<3x172xf32> -> vector<3x172xf32>
    %300 = arith.addf %295, %299 : vector<3x172xf32>
    %c0_305 = arith.constant 0 : index
    %c38_306 = arith.constant 38 : index
    %301 = vector.load %arg13[%c0_305, %c38_306] : memref<8x324xf32, #tpu.memory_space<vmem>>, vector<8x172xf32>
    %c8_307 = arith.constant 8 : index
    %c0_308 = arith.constant 0 : index
    %c0_309 = arith.constant 0 : index
    %302 = vector.load %arg5[%c8_307, %c0_308, %c0_309] : memref<9x3x8xf32, #tpu.memory_space<vmem>>, vector<1x3x8xf32>
    %303 = vector.shape_cast %302 : vector<1x3x8xf32> to vector<3x8xf32>
    %cst_310 = arith.constant dense<0.000000e+00> : vector<3x172xf32>
    %304 = tpu.matmul %303, %301, %cst_310 {dimension_numbers = #tpu.dot_dimension_numbers<[1], [0], [0], [1], [0, 0, 1, 1], [], []>} : vector<3x8xf32>, vector<8x172xf32>, vector<3x172xf32> -> vector<3x172xf32>
    %305 = arith.addf %300, %304 : vector<3x172xf32>
    %c0_311 = arith.constant 0 : index
    %c0_312 = arith.constant 0 : index
    %306 = vector.load %arg9[%c0_311, %c0_312] : memref<3x1xf32, #tpu.memory_space<vmem>>, vector<3x1xf32>
    %307 = vector.broadcast %306 : vector<3x1xf32> to vector<3x172xf32>
    %308 = arith.addf %305, %307 : vector<3x172xf32>
    %309 = vector.extract_strided_slice %308 {offsets = [0, 0], sizes = [3, 10], strides = [1, 1]} : vector<3x172xf32> to vector<3x10xf32>
    %c0_313 = arith.constant 0 : index
    %c0_314 = arith.constant 0 : index
    %c0_315 = arith.constant 0 : index
    %310 = vector.load %arg10[%c0_313, %c0_314, %c0_315] : memref<1x3x100xf32, #tpu.memory_space<vmem>>, vector<1x3x10xf32>
    %311 = vector.shape_cast %310 : vector<1x3x10xf32> to vector<3x10xf32>
    %312 = vector.shape_cast %309 : vector<3x10xf32> to vector<1x3x10xf32>
    tpu.vector_store %arg10[%c0_313, %c0_314, %c0_315], %312 {strides = array<i32>} : memref<1x3x100xf32, #tpu.memory_space<vmem>>, vector<1x3x10xf32>,
    %313 = vector.extract_strided_slice %308 {offsets = [0, 18], sizes = [3, 10], strides = [1, 1]} : vector<3x172xf32> to vector<3x10xf32>
    %c0_316 = arith.constant 0 : index
    %c0_317 = arith.constant 0 : index
    %c10_318 = arith.constant 10 : index
    %314 = vector.load %arg10[%c0_316, %c0_317, %c10_318] : memref<1x3x100xf32, #tpu.memory_space<vmem>>, vector<1x3x10xf32>
    %315 = vector.shape_cast %314 : vector<1x3x10xf32> to vector<3x10xf32>
    %316 = vector.shape_cast %313 : vector<3x10xf32> to vector<1x3x10xf32>
    tpu.vector_store %arg10[%c0_316, %c0_317, %c10_318], %316 {strides = array<i32>} : memref<1x3x100xf32, #tpu.memory_space<vmem>>, vector<1x3x10xf32>,
    %317 = vector.extract_strided_slice %308 {offsets = [0, 36], sizes = [3, 10], strides = [1, 1]} : vector<3x172xf32> to vector<3x10xf32>
    %c0_319 = arith.constant 0 : index
    %c0_320 = arith.constant 0 : index
    %c20_321 = arith.constant 20 : index
    %318 = vector.load %arg10[%c0_319, %c0_320, %c20_321] : memref<1x3x100xf32, #tpu.memory_space<vmem>>, vector<1x3x10xf32>
    %319 = vector.shape_cast %318 : vector<1x3x10xf32> to vector<3x10xf32>
    %320 = vector.shape_cast %317 : vector<3x10xf32> to vector<1x3x10xf32>
    tpu.vector_store %arg10[%c0_319, %c0_320, %c20_321], %320 {strides = array<i32>} : memref<1x3x100xf32, #tpu.memory_space<vmem>>, vector<1x3x10xf32>,
    %321 = vector.extract_strided_slice %308 {offsets = [0, 54], sizes = [3, 10], strides = [1, 1]} : vector<3x172xf32> to vector<3x10xf32>
    %c0_322 = arith.constant 0 : index
    %c0_323 = arith.constant 0 : index
    %c30 = arith.constant 30 : index
    %322 = vector.load %arg10[%c0_322, %c0_323, %c30] : memref<1x3x100xf32, #tpu.memory_space<vmem>>, vector<1x3x10xf32>
    %323 = vector.shape_cast %322 : vector<1x3x10xf32> to vector<3x10xf32>
    %324 = vector.shape_cast %321 : vector<3x10xf32> to vector<1x3x10xf32>
    tpu.vector_store %arg10[%c0_322, %c0_323, %c30], %324 {strides = array<i32>} : memref<1x3x100xf32, #tpu.memory_space<vmem>>, vector<1x3x10xf32>,
    %325 = vector.extract_strided_slice %308 {offsets = [0, 72], sizes = [3, 10], strides = [1, 1]} : vector<3x172xf32> to vector<3x10xf32>
    %c0_324 = arith.constant 0 : index
    %c0_325 = arith.constant 0 : index
    %c40_326 = arith.constant 40 : index
    %326 = vector.load %arg10[%c0_324, %c0_325, %c40_326] : memref<1x3x100xf32, #tpu.memory_space<vmem>>, vector<1x3x10xf32>
    %327 = vector.shape_cast %326 : vector<1x3x10xf32> to vector<3x10xf32>
    %328 = vector.shape_cast %325 : vector<3x10xf32> to vector<1x3x10xf32>
    tpu.vector_store %arg10[%c0_324, %c0_325, %c40_326], %328 {strides = array<i32>} : memref<1x3x100xf32, #tpu.memory_space<vmem>>, vector<1x3x10xf32>,
    %329 = vector.extract_strided_slice %308 {offsets = [0, 90], sizes = [3, 10], strides = [1, 1]} : vector<3x172xf32> to vector<3x10xf32>
    %c0_327 = arith.constant 0 : index
    %c0_328 = arith.constant 0 : index
    %c50 = arith.constant 50 : index
    %330 = vector.load %arg10[%c0_327, %c0_328, %c50] : memref<1x3x100xf32, #tpu.memory_space<vmem>>, vector<1x3x10xf32>
    %331 = vector.shape_cast %330 : vector<1x3x10xf32> to vector<3x10xf32>
    %332 = vector.shape_cast %329 : vector<3x10xf32> to vector<1x3x10xf32>
    tpu.vector_store %arg10[%c0_327, %c0_328, %c50], %332 {strides = array<i32>} : memref<1x3x100xf32, #tpu.memory_space<vmem>>, vector<1x3x10xf32>,
    %333 = vector.extract_strided_slice %308 {offsets = [0, 108], sizes = [3, 10], strides = [1, 1]} : vector<3x172xf32> to vector<3x10xf32>
    %c0_329 = arith.constant 0 : index
    %c0_330 = arith.constant 0 : index
    %c60 = arith.constant 60 : index
    %334 = vector.load %arg10[%c0_329, %c0_330, %c60] : memref<1x3x100xf32, #tpu.memory_space<vmem>>, vector<1x3x10xf32>
    %335 = vector.shape_cast %334 : vector<1x3x10xf32> to vector<3x10xf32>
    %336 = vector.shape_cast %333 : vector<3x10xf32> to vector<1x3x10xf32>
    tpu.vector_store %arg10[%c0_329, %c0_330, %c60], %336 {strides = array<i32>} : memref<1x3x100xf32, #tpu.memory_space<vmem>>, vector<1x3x10xf32>,
    %337 = vector.extract_strided_slice %308 {offsets = [0, 126], sizes = [3, 10], strides = [1, 1]} : vector<3x172xf32> to vector<3x10xf32>
    %c0_331 = arith.constant 0 : index
    %c0_332 = arith.constant 0 : index
    %c70 = arith.constant 70 : index
    %338 = vector.load %arg10[%c0_331, %c0_332, %c70] : memref<1x3x100xf32, #tpu.memory_space<vmem>>, vector<1x3x10xf32>
    %339 = vector.shape_cast %338 : vector<1x3x10xf32> to vector<3x10xf32>
    %340 = vector.shape_cast %337 : vector<3x10xf32> to vector<1x3x10xf32>
    tpu.vector_store %arg10[%c0_331, %c0_332, %c70], %340 {strides = array<i32>} : memref<1x3x100xf32, #tpu.memory_space<vmem>>, vector<1x3x10xf32>,
    %341 = vector.extract_strided_slice %308 {offsets = [0, 144], sizes = [3, 10], strides = [1, 1]} : vector<3x172xf32> to vector<3x10xf32>
    %c0_333 = arith.constant 0 : index
    %c0_334 = arith.constant 0 : index
    %c80 = arith.constant 80 : index
    %342 = vector.load %arg10[%c0_333, %c0_334, %c80] : memref<1x3x100xf32, #tpu.memory_space<vmem>>, vector<1x3x10xf32>
    %343 = vector.shape_cast %342 : vector<1x3x10xf32> to vector<3x10xf32>
    %344 = vector.shape_cast %341 : vector<3x10xf32> to vector<1x3x10xf32>
    tpu.vector_store %arg10[%c0_333, %c0_334, %c80], %344 {strides = array<i32>} : memref<1x3x100xf32, #tpu.memory_space<vmem>>, vector<1x3x10xf32>,
    %345 = vector.extract_strided_slice %308 {offsets = [0, 162], sizes = [3, 10], strides = [1, 1]} : vector<3x172xf32> to vector<3x10xf32>
    %c0_335 = arith.constant 0 : index
    %c0_336 = arith.constant 0 : index
    %c90 = arith.constant 90 : index
    %346 = vector.load %arg10[%c0_335, %c0_336, %c90] : memref<1x3x100xf32, #tpu.memory_space<vmem>>, vector<1x3x10xf32>
    %347 = vector.shape_cast %346 : vector<1x3x10xf32> to vector<3x10xf32>
    %348 = vector.shape_cast %345 : vector<3x10xf32> to vector<1x3x10xf32>
    tpu.vector_store %arg10[%c0_335, %c0_336, %c90], %348 {strides = array<i32>} : memref<1x3x100xf32, #tpu.memory_space<vmem>>, vector<1x3x10xf32>,
    return
  }
  func.func @transform_0(%arg0: i32) -> (i32, i32, i32) {
    %c0_i32 = arith.constant 0 : i32
    %c0_i32_0 = arith.constant 0 : i32
    %c0_i32_1 = arith.constant 0 : i32
    return %arg0, %c0_i32, %c0_i32_0 : i32, i32, i32
  }
  func.func @transform_1(%arg0: i32) -> (i32, i32, i32) {
    %c0_i32 = arith.constant 0 : i32
    %c0_i32_0 = arith.constant 0 : i32
    %c0_i32_1 = arith.constant 0 : i32
    %c0_i32_2 = arith.constant 0 : i32
    return %c0_i32, %c0_i32_0, %c0_i32_1 : i32, i32, i32
  }
  func.func @transform_2(%arg0: i32) -> (i32, i32, i32) {
    %c0_i32 = arith.constant 0 : i32
    %c0_i32_0 = arith.constant 0 : i32
    %c0_i32_1 = arith.constant 0 : i32
    %c0_i32_2 = arith.constant 0 : i32
    return %c0_i32, %c0_i32_0, %c0_i32_1 : i32, i32, i32
  }
  func.func @transform_3(%arg0: i32) -> (i32, i32, i32) {
    %c0_i32 = arith.constant 0 : i32
    %c0_i32_0 = arith.constant 0 : i32
    %c0_i32_1 = arith.constant 0 : i32
    %c0_i32_2 = arith.constant 0 : i32
    return %c0_i32, %c0_i32_0, %c0_i32_1 : i32, i32, i32
  }
  func.func @transform_4(%arg0: i32) -> (i32, i32, i32) {
    %c0_i32 = arith.constant 0 : i32
    %c0_i32_0 = arith.constant 0 : i32
    %c0_i32_1 = arith.constant 0 : i32
    %c0_i32_2 = arith.constant 0 : i32
    return %c0_i32, %c0_i32_0, %c0_i32_1 : i32, i32, i32
  }
  func.func @transform_5(%arg0: i32) -> (i32, i32) {
    %c0_i32 = arith.constant 0 : i32
    %c0_i32_0 = arith.constant 0 : i32
    %c0_i32_1 = arith.constant 0 : i32
    return %c0_i32, %c0_i32_0 : i32, i32
  }
  func.func @transform_6(%arg0: i32) -> (i32, i32) {
    %c0_i32 = arith.constant 0 : i32
    %c0_i32_0 = arith.constant 0 : i32
    %c0_i32_1 = arith.constant 0 : i32
    return %c0_i32, %c0_i32_0 : i32, i32
  }
  func.func @transform_7(%arg0: i32) -> (i32, i32) {
    %c0_i32 = arith.constant 0 : i32
    %c0_i32_0 = arith.constant 0 : i32
    %c0_i32_1 = arith.constant 0 : i32
    return %c0_i32, %c0_i32_0 : i32, i32
  }
  func.func @transform_8(%arg0: i32) -> (i32, i32) {
    %c0_i32 = arith.constant 0 : i32
    %c0_i32_0 = arith.constant 0 : i32
    %c0_i32_1 = arith.constant 0 : i32
    return %c0_i32, %c0_i32_0 : i32, i32
  }
  func.func @transform_9(%arg0: i32) -> (i32, i32, i32) {
    %c0_i32 = arith.constant 0 : i32
    %c0_i32_0 = arith.constant 0 : i32
    %c0_i32_1 = arith.constant 0 : i32
    return %arg0, %c0_i32, %c0_i32_0 : i32, i32, i32
  }
}

</mosaic_0001>

<bundles_post_ra>
// kernel: tpu_custom_call.1
= control target key start
LH: loop header
LB: loop body
LE: loop exit
PB: predicated region body
PF: predicated region fallthrough
CT: control target
= control target key end

     0   :  { %s6053_s30 = smov 0   ;;  %s6737_s0 = inlined_call_operand.vmem [shape: f32[2,3,324], index: 0, kind: input, shape index: {}]   ;;  %s6738_s1 = inlined_call_operand.vmem [shape: f32[9,8,3], index: 1, kind: input, shape index: {}]   ;;  %s6739_s2 = inlined_call_operand.vmem [shape: f32[25,8,8], index: 2, kind: input, shape index: {}]   ;;  %s6740_s3 = inlined_call_operand.vmem [shape: f32[9,8,8], index: 3, kind: input, shape index: {}]   ;;  %s6741_s4 = inlined_call_operand.vmem [shape: f32[9,3,8], index: 4, kind: input, shape index: {}]   ;;  %s6742_s5 = inlined_call_operand.vmem [shape: f32[8,1], index: 5, kind: input, shape index: {}]   ;;  %s6743_s6 = inlined_call_operand.vmem [shape: f32[8,1], index: 6, kind: input, shape index: {}]   ;;  %s6744_s7 = inlined_call_operand.vmem [shape: f32[8,1], index: 7, kind: input, shape index: {}]   ;;  %s6745_s8 = inlined_call_operand.vmem [shape: f32[3,1], index: 8, kind: input, shape index: {}]   ;;  %s6746_s9 = inlined_call_operand.vmem [shape: f32[2,3,100], index: 9, kind: output, shape index: {}]  }
   0x1 LB: > { %s5699_s10 = sadd.s32 4294967295, %s5967_s30   ;;  %p5703_p0 = scmp.ge.s32.totalorder %s5967_s30, 1  ;;  %s5967_s30 = sphi %s6053_s30, %s19_s30  }
   0x2   : > { %p287_p1 = scmp.lt.s32.totalorder %s5967_s30, 3 }
   0x4   : > { %p288_p2 = pnand %p5703_p0, %p287_p1 }
   0x5   : > { %p322_p3 = scmp.lt.s32.totalorder (!%p288_p2), %s5699_s10, 1  ;;  %s5971_s15 = smov (!%p288_p2), 127  }
   0x6   : > { %291 = sbr.rel (%p288_p2) target bundleno = 1771 (0x6eb), region = 56  ;;  %s5972_s16 = smov (!%p288_p2), 126  }
   0x7   : > { %s5973_s17 = smov (!%p288_p2), 110   ;;  %s5974_s18 = smov (!%p288_p2), 109  }
   0x8   : > { %s5975_s19 = smov (!%p288_p2), 108   ;;  %s5976_s20 = smov (!%p288_p2), 92  }
   0x9   : > { %s5978_s21 = smov (!%p288_p2), 91   ;;  %s5979_s22 = smov (!%p288_p2), 90  }
   0xa   : > { %s5980_s13 = smov (!%p288_p2), 73   ;;  %s6751_s23 = smov (!%p288_p2), 71  }
   0xb   : > { %v5969_v0 = vmov 0.0   ;;  %vm5970_vm0 = vmmov 0   ;;  %s6771_s10 = smov (!%p322_p3, %s5699_s10), 1  ;;  %v5977_v23 = vmov 0   ;;  %v1833_v26 = vld [vmem:[%s6742_s5] sm:$0xff]  ;;  %vm352_vm1 = vcmask 1042432  }
   0xc   : > { %5862 = vmatprep.subr.mxu1 %v5969_v0  ;;  %4027 = vst [vmem:[#allocation4] sm:$0xff] %v5969_v0  ;;  %4028 = vst [vmem:[#allocation4 + $0x8] sm:$0xff] %v5969_v0  ;;  %5864 = vmatprep.mubr.msk.f32.mxu1 %vm5970_vm0, %v5969_v0  ;;  %s5907_s11 = smul.u32 12, %s6771_s10  ;;  %v5706_v27 = vld [vmem:[%s6738_s1 + $0x8] sm:$0xff]  ;;  %vm348_vm2 = vcmask 23552   ;;  %v333_v30 = vld [vmem:[%s6738_s1] sm:$0xff] }
   0xd   : > { %423 = vmatprep.mubr.f32.mxu0 %v5969_v0  ;;  %5950 = vset.pattern.permute.xlu0 %v5977_v23  ;;  %vm345_vm3 = vcmask 1039360   ;;  %v5717_v33 = vld [vmem:[%s6738_s1 + $0x10] sm:$0xff]  ;;  %vm663_vm4 = vcmask 1031168   ;;  %v5723_v40 = vld [vmem:[%s6738_s1 + $0x18] sm:$0xff]  ;;  %vm832_vm5 = vcmask 900096   ;;  %vm6759_vm6 = vcmask 891904  }
   0xe   : > { %s6073_s14 = scalar_lea.vmem %s6737_s0, %s5907_s11  ;;  %5951 = vset.pattern.permute.xlu1 %v5977_v23  ;;  %v5729_v46 = vld [vmem:[%s6738_s1 + $0x20] sm:$0xff]  ;;  %vm6758_vm7 = vcmask 883712   ;;  %v5735_v51 = vld [vmem:[%s6738_s1 + $0x28] sm:$0xff]  ;;  %vm6757_vm8 = vcmask 752640   ;;  %v5741_v59 = vld [vmem:[%s6738_s1 + $0x30] sm:$0xff]  ;;  %vm6756_vm9 = vcmask 744448  }
   0xf   : > { %v6076_v1 = vld [vmem:[%s6073_s14 + $0x8] sm:$0x7]  ;;  %v6079_v2 = vld [vmem:[%s6073_s14] sm:$0x77]  ;;  %vm6755_vm10 = vcmask 736256   ;;  %vm1844_vm11 = vcmask 244736  }
  0x10   : > { %343 = vrot.lane.b32.xlu0 %v6076_v1, %s5971_s15  ;;  %339 = vrot.lane.b32.xlu1 %v6079_v2, %s5971_s15  ;;  %v651_v3 = vld [vmem:[%s6073_s14 + $0x8] sm:$0x7]  ;;  %v650_v4 = vld [vmem:[%s6073_s14] sm:$0x77]  ;;  %v6091_v6 = vcombine.high %v6079_v2, %v6079_v2  ;;  %s5983_s24 = smov 72   ;;  %s6752_s25 = smov 56  }
  0x11   : > { %v656_v5 = vcombine.high %v650_v4, %v650_v4  ;;  %v819_v7 = vld [vmem:[%s6073_s14] sm:$0x77]  ;;  %v820_v9 = vld [vmem:[%s6073_s14 + $0x8] sm:$0x7]  ;;  %s5985_s26 = smov 70   ;;  %s5986_s27 = smov 54  }
  0x12   : > { %v825_v8 = vcombine.high %v819_v7, %v819_v7  ;;  %v988_v10 = vld [vmem:[%s6073_s14] sm:$0x77]  ;;  %v989_v12 = vld [vmem:[%s6073_s14 + $0x8] sm:$0x7]  ;;  %s6749_s28 = smov 55   ;;  %s6747_s29 = smov 53  }
  0x13   : > { %v994_v11 = vcombine.high %v988_v10, %v988_v10  ;;  %v1157_v13 = vld [vmem:[%s6073_s14] sm:$0x77]  ;;  %v1158_v15 = vld [vmem:[%s6073_s14 + $0x8] sm:$0x7]  ;;  %s5989_s11 = smov 125   ;;  %s5990_s12 = smov 124  }
  0x14   : > { %661 = vrot.lane.b32.xlu0 %v651_v3, %s5972_s16  ;;  %657 = vrot.lane.b32.xlu1 %v650_v4, %s5972_s16  ;;  %v1163_v14 = vcombine.high %v1157_v13, %v1157_v13  ;;  %v1326_v16 = vld [vmem:[%s6073_s14] sm:$0x77]  ;;  %v1327_v18 = vld [vmem:[%s6073_s14 + $0x8] sm:$0x7]  ;;  %vm1860_vm12 = vcmask 64512   ;;  %vm2100_vm13 = vcmask 1022976  }
  0x15   : > { %v1332_v17 = vcombine.high %v1326_v16, %v1326_v16  ;;  %v1495_v19 = vld [vmem:[%s6073_s14] sm:$0x77]  ;;  %v1496_v21 = vld [vmem:[%s6073_s14 + $0x8] sm:$0x7]  ;;  %vm2186_vm14 = vcmask 1014784   ;;  %vm2527_vm15 = vcmask 875520  }
  0x16   : > { %v1501_v20 = vcombine.high %v1495_v19, %v1495_v19  ;;  %v1664_v22 = vld [vmem:[%s6073_s14] sm:$0x77]  ;;  %v1665_v25 = vld [vmem:[%s6073_s14 + $0x8] sm:$0x7]  ;;  %s5981_s14 = smov 74  }
  0x17   : > { %v1670_v24 = vcombine.high %v1664_v22, %v1664_v22 }
  0x18   : > { %659 = vrot.lane.b32.xlu1 %v656_v5, %s5972_s16  ;;  %341 = vrot.lane.b32.xlu0 %v6091_v6, %s5971_s15 }
  0x1c   : > { %830 = vrot.lane.b32.xlu1 %v820_v9, %s5973_s17  ;;  %828 = vrot.lane.b32.xlu0 %v825_v8, %s5973_s17  ;;  %v5753_v8 = vld [vmem:[%s6738_s1 + $0x40] sm:$0xff] }
  0x20   : > { %997 = vrot.lane.b32.xlu1 %v994_v11, %s5974_s18  ;;  %826 = vrot.lane.b32.xlu0 %v819_v7, %s5973_s17 }
  0x24   : > { %995 = vrot.lane.b32.xlu1 %v988_v10, %s5974_s18  ;;  %999 = vrot.lane.b32.xlu0 %v989_v12, %s5974_s18 }
  0x28   : > { %1168 = vrot.lane.b32.xlu1 %v1158_v15, %s5975_s19  ;;  %1166 = vrot.lane.b32.xlu0 %v1163_v14, %s5975_s19 }
  0x2c   : > { %1335 = vrot.lane.b32.xlu1 %v1332_v17, %s5976_s20  ;;  %1164 = vrot.lane.b32.xlu0 %v1157_v13, %s5975_s19 }
  0x30   : > { %1333 = vrot.lane.b32.xlu1 %v1326_v16, %s5976_s20  ;;  %1337 = vrot.lane.b32.xlu0 %v1327_v18, %s5976_s20 }
  0x34   : > { %1506 = vrot.lane.b32.xlu1 %v1496_v21, %s5978_s21  ;;  %1504 = vrot.lane.b32.xlu0 %v1501_v20, %s5978_s21 }
  0x38   : > { %1502 = vrot.lane.b32.xlu0 %v1495_v19, %s5978_s21  ;;  %1673 = vrot.lane.b32.xlu1 %v1670_v24, %s5979_s22 }
  0x3c   : > { %1675 = vrot.lane.b32.xlu0 %v1665_v25, %s5979_s22  ;;  %1671 = vrot.lane.b32.xlu1 %v1664_v22, %s5979_s22 }
  0x40   : > { %1836 = vperm.xlu0 %5950, %v1833_v26  }
  0x82   : > { %v344_v28 = vpop.permute.xlu0 %343  ;;  %v340_v29 = vpop.permute.xlu1 %339 }
  0x83   : > { %5863 = vmatpush3.msk.msra.mxu1 %vm352_vm1, %v344_v28 }
  0x84   : > { %5865 = vmatmul.mubr.msk.f32.vlgmr.msra.gmra.mxu1 %vm348_vm2, %v5706_v27  ;;  %5867 = vmatprep.subr.mxu1 %v5969_v0 }
  0x85   : > { %5868 = vmatpush3.msk.msra.mxu1 %vm352_vm1, %v6076_v1  ;;  %5869 = vmatprep.mubr.msk.f32.mxu1 %vm5970_vm0, %v5969_v0  ;;  %v5747_v1 = vld [vmem:[%s6738_s1 + $0x38] sm:$0xff] }
  0x86   : > { %v662_v31 = vpop.permute.xlu0 %661  ;;  %v658_v32 = vpop.permute.xlu1 %657  ;;  %5872 = vmatprep.subr.mxu1 %v5969_v0 }
  0x88   : > { %5870 = vmatmul.mubr.msk.f32.vlgmr.msra.gmra.mxu1 %vm348_vm2, %v333_v30 }
  0x89   : > { %5873 = vmatpush3.msk.msra.mxu1 %vm352_vm1, %v662_v31  ;;  %5874 = vmatprep.mubr.msk.f32.mxu1 %vm5970_vm0, %v5969_v0 }
  0x8a   : > { %v660_v34 = vpop.permute.xlu1 %659  ;;  %v342_v35 = vpop.permute.xlu0 %341  ;;  %5877 = vmatprep.subr.mxu1 %v5969_v0 }
  0x8b   : > { %v347_v36 = vsel %vm345_vm3, %v342_v35, %v344_v28  ;;  %v346_v37 = vsel %vm345_vm3, %v340_v29, %v342_v35  ;;  %v665_v41 = vsel %vm663_vm4, %v660_v34, %v662_v31  ;;  %v664_v42 = vsel %vm663_vm4, %v658_v32, %v660_v34 }
  0x8c   : > { %5707 = vmatprep.subr.msk.mxu0 %vm352_vm1, %v347_v36  ;;  %5875 = vmatmul.mubr.msk.f32.vlgmr.msra.gmra.mxu1 %vm348_vm2, %v5717_v33 }
  0x8d   : > { %5708 = vmatpush1.msk.msra.mxu0 %vm352_vm1, %v346_v37  ;;  %5879 = vmatprep.mubr.msk.f32.mxu1 %vm5970_vm0, %v5969_v0 }
  0x8e   : > { %v831_v38 = vpop.permute.xlu1 %830  ;;  %5709 = vmatmul.mubr.msk.f32.vlgmr.msra.gmra.mxu0 %vm348_vm2, %v5706_v27  ;;  %5712 = vmatprep.subr.msk.mxu0 %vm352_vm1, %v6091_v6  ;;  %v829_v39 = vpop.permute.xlu0 %828 }
  0x8f   : > { %5713 = vmatpush1.msk.msra.mxu0 %vm352_vm1, %v6079_v2  ;;  %573 = vmatprep.mubr.f32.mxu0 %v5969_v0  ;;  %v834_v45 = vsel %vm832_vm5, %v829_v39, %v831_v38 }
  0x90   : > { %5718 = vmatprep.subr.msk.mxu0 %vm352_vm1, %v665_v41  ;;  %5878 = vmatpush3.msk.msra.mxu1 %vm352_vm1, %v831_v38 }
  0x91   : > { %5880 = vmatmul.mubr.msk.f32.vlgmr.msra.gmra.mxu1 %vm348_vm2, %v5723_v40  ;;  %5882 = vmatprep.subr.mxu1 %v5969_v0 }
  0x92   : > { %v998_v43 = vpop.permute.xlu1 %997  ;;  %5714 = vmatmul.mubr.msk.f32.vlgmr.msra.gmra.mxu0 %vm348_vm2, %v333_v30  ;;  %v827_v44 = vpop.permute.xlu0 %826  ;;  %5884 = vmatprep.mubr.msk.f32.mxu1 %vm5970_vm0, %v5969_v0 }
  0x93   : > { %5719 = vmatpush1.msk.msra.mxu0 %vm352_vm1, %v664_v42  ;;  %739 = vmatprep.mubr.f32.mxu0 %v5969_v0  ;;  %v833_v47 = vsel %vm832_vm5, %v827_v44, %v829_v39 }
  0x94   : > { %5724 = vmatprep.subr.msk.mxu0 %vm352_vm1, %v834_v45 }
  0x96   : > { %v996_v48 = vpop.permute.xlu1 %995  ;;  %5720 = vmatmul.mubr.msk.f32.vlgmr.msra.gmra.mxu0 %vm348_vm2, %v5717_v33  ;;  %v1000_v49 = vpop.permute.xlu0 %999 }
  0x97   : > { %5725 = vmatpush1.msk.msra.mxu0 %vm352_vm1, %v833_v47  ;;  %5883 = vmatpush3.msk.msra.mxu1 %vm352_vm1, %v1000_v49  ;;  %v1003_v50 = vsel %vm6759_vm6, %v998_v43, %v1000_v49  ;;  %v1002_v52 = vsel %vm6759_vm6, %v996_v48, %v998_v43 }
  0x98   : > { %5730 = vmatprep.subr.msk.mxu0 %vm352_vm1, %v1003_v50  ;;  %5885 = vmatmul.mubr.msk.f32.vlgmr.msra.gmra.mxu1 %vm348_vm2, %v5729_v46 }
  0x99   : > { %908 = vmatprep.mubr.f32.mxu0 %v5969_v0  ;;  %5887 = vmatprep.subr.mxu1 %v5969_v0 }
  0x9a   : > { %v1169_v53 = vpop.permute.xlu1 %1168  ;;  %5726 = vmatmul.mubr.msk.f32.vlgmr.msra.gmra.mxu0 %vm348_vm2, %v5723_v40  ;;  %v1167_v54 = vpop.permute.xlu0 %1166  ;;  %5889 = vmatprep.mubr.msk.f32.mxu1 %vm5970_vm0, %v5969_v0 }
  0x9b   : > { %5731 = vmatpush1.msk.msra.mxu0 %vm352_vm1, %v1002_v52  ;;  %5888 = vmatpush3.msk.msra.mxu1 %vm352_vm1, %v1169_v53  ;;  %v1172_v55 = vsel %vm6758_vm7, %v1167_v54, %v1169_v53 }
  0x9c   : > { %5736 = vmatprep.subr.msk.mxu0 %vm352_vm1, %v1172_v55  ;;  %5890 = vmatmul.mubr.msk.f32.vlgmr.msra.gmra.mxu1 %vm348_vm2, %v5735_v51 }
  0x9d   : > { %1077 = vmatprep.mubr.f32.mxu0 %v5969_v0  ;;  %5892 = vmatprep.subr.mxu1 %v5969_v0 }
  0x9e   : > { %v1336_v56 = vpop.permute.xlu1 %1335  ;;  %v1165_v57 = vpop.permute.xlu0 %1164  ;;  %5732 = vmatmul.mubr.msk.f32.vlgmr.msra.gmra.mxu0 %vm348_vm2, %v5729_v46  ;;  %5894 = vmatprep.mubr.msk.f32.mxu1 %vm5970_vm0, %v5969_v0 }
  0x9f   : > { %v1171_v58 = vsel %vm6758_vm7, %v1165_v57, %v1167_v54  ;;  %1246 = vmatprep.mubr.f32.mxu0 %v5969_v0 }
  0xa0   : > { %5737 = vmatpush1.msk.msra.mxu0 %vm352_vm1, %v1171_v58 }
  0xa2   : > { %v1334_v60 = vpop.permute.xlu1 %1333  ;;  %v1338_v61 = vpop.permute.xlu0 %1337  ;;  %5738 = vmatmul.mubr.msk.f32.vlgmr.msra.gmra.mxu0 %vm348_vm2, %v5735_v51 }
  0xa3   : > { %v1340_v62 = vsel %vm6757_vm8, %v1334_v60, %v1336_v56  ;;  %5893 = vmatpush3.msk.msra.mxu1 %vm352_vm1, %v1338_v61  ;;  %v1341_v63 = vsel %vm6757_vm8, %v1336_v56, %v1338_v61  ;;  %1415 = vmatprep.mubr.f32.mxu0 %v5969_v0 }
  0xa4   : > { %5742 = vmatprep.subr.msk.mxu0 %vm352_vm1, %v1341_v63  ;;  %5895 = vmatmul.mubr.msk.f32.vlgmr.msra.gmra.mxu1 %vm348_vm2, %v5741_v59 }
  0xa5   : > { %5743 = vmatpush1.msk.msra.mxu0 %vm352_vm1, %v1340_v62  ;;  %5897 = vmatprep.subr.mxu1 %v5969_v0 }
  0xa6   : > { %v1507_v2 = vpop.permute.xlu1 %1506  ;;  %v1505_v3 = vpop.permute.xlu0 %1504  ;;  %5899 = vmatprep.mubr.msk.f32.mxu1 %vm5970_vm0, %v5969_v0  ;;  %5744 = vmatmul.mubr.msk.f32.vlgmr.msra.gmra.mxu0 %vm348_vm2, %v5741_v59 }
  0xa7   : > { %5898 = vmatpush3.msk.msra.mxu1 %vm352_vm1, %v1507_v2  ;;  %v1510_v4 = vsel %vm6756_vm9, %v1505_v3, %v1507_v2  ;;  %1584 = vmatprep.mubr.f32.mxu0 %v5969_v0 }
  0xa8   : > { %5748 = vmatprep.subr.msk.mxu0 %vm352_vm1, %v1510_v4  ;;  %5900 = vmatmul.mubr.msk.f32.vlgmr.msra.gmra.mxu1 %vm348_vm2, %v5747_v1 }
  0xa9   : > { %5902 = vmatprep.subr.mxu1 %v5969_v0  ;;  %5904 = vmatprep.mubr.msk.f32.mxu1 %vm5970_vm0, %v5969_v0  ;;  %vm2613_vm0 = vcmask 867328  }
  0xaa   : > { %v1503_v5 = vpop.permute.xlu0 %1502  ;;  %v1674_v6 = vpop.permute.xlu1 %1673 }
  0xab   : > { %v1509_v7 = vsel %vm6756_vm9, %v1503_v5, %v1505_v3 }
  0xac   : > { %5749 = vmatpush1.msk.msra.mxu0 %vm352_vm1, %v1509_v7 }
  0xad   : > { %5750 = vmatmul.mubr.msk.f32.vlgmr.msra.gmra.mxu0 %vm348_vm2, %v5747_v1 }
  0xae   : > { %v1676_v9 = vpop.permute.xlu0 %1675  ;;  %v1672_v10 = vpop.permute.xlu1 %1671  ;;  %1753 = vmatprep.mubr.f32.mxu0 %v5969_v0 }
  0xaf   : > { %v1678_v11 = vsel %vm6755_vm10, %v1672_v10, %v1674_v6  ;;  %5903 = vmatpush3.msk.msra.mxu1 %vm352_vm1, %v1676_v9  ;;  %v1679_v12 = vsel %vm6755_vm10, %v1674_v6, %v1676_v9 }
  0xb0   : > { %5754 = vmatprep.subr.msk.mxu0 %vm352_vm1, %v1679_v12  ;;  %5905 = vmatmul.mubr.msk.f32.vlgmr.msra.gmra.mxu1 %vm348_vm2, %v5753_v8 }
  0xb1   : > { %5755 = vmatpush1.msk.msra.mxu0 %vm352_vm1, %v1678_v11  ;;  %2002 = vmatprep.mubr.f32.mxu1 %v5969_v0  ;;  %vm3134_vm1 = vcmask 605184  }
  0xb2   : > { %5756 = vmatmul.mubr.msk.f32.vlgmr.msra.gmra.mxu0 %vm348_vm2, %v5753_v8  ;;  %vm2954_vm2 = vcmask 728064  }
  0xb3   : > { %1928 = vmatprep.mubr.f32.mxu0 %v5969_v0 }
  0xbb   : > { %v1837_v3 = vpop.permute.xlu0 %1836 }
 0x144   : > { %v496_v13 = vpop.f32.mrf.mxu1 }
 0x146   : > { %v5866_v14 = vpop.f32.mrf.mxu1 }
 0x148   : > { %v646_v15 = vpop.f32.mrf.mxu1 }
 0x149   : > { %v647_v38 = vadd.f32 %v646_v15, %v496_v13  ;;  %v1848_v15 = vld [vmem:[%s6739_s2] sm:$0xff] }
 0x14a   : > { %v5871_v16 = vpop.f32.mrf.mxu1 }
 0x14b   : > { %v4016_v16 = vld [vmem:[%s6743_s6] sm:$0xff] }
 0x14c   : > { %v812_v17 = vpop.f32.mrf.mxu1 }
 0x14d   : > { %v818_v43 = vadd.f32 %v812_v17, %v647_v38 }
 0x14e   : > { %v425_v18 = vpop.f32.mrf.mxu0  ;;  %v5876_v19 = vpop.f32.mrf.mxu1 }
 0x150   : > { %v427_v20 = vpop.f32.mrf.mxu0 }
 0x151   : > { %v981_v21 = vpop.f32.mrf.mxu1 }
 0x152   : > { %v575_v22 = vpop.f32.mrf.mxu0  ;;  %v987_v50 = vadd.f32 %v981_v21, %v818_v43  ;;  %v5762_v43 = vld [vmem:[%s6739_s2 + $0x10] sm:$0xff] }
 0x153   : > { %v5881_v23 = vpop.f32.mrf.mxu1  ;;  %v576_v26 = vadd.f32 %v575_v22, %v425_v18 }
 0x154   : > { %v577_v24 = vpop.f32.mrf.mxu0 }
 0x155   : > { %v578_v29 = vadd.f32 %v577_v24, %v427_v20 }
 0x156   : > { %v741_v25 = vpop.f32.mrf.mxu0 }
 0x157   : > { %v816_v32 = vadd.f32 %v741_v25, %v576_v26 }
 0x158   : > { %v1150_v27 = vpop.f32.mrf.mxu1  ;;  %v743_v28 = vpop.f32.mrf.mxu0 }
 0x159   : > { %v817_v35 = vadd.f32 %v743_v28, %v578_v29  ;;  %v1156_v53 = vadd.f32 %v1150_v27, %v987_v50 }
 0x15a   : > { %v5886_v30 = vpop.f32.mrf.mxu1  ;;  %v910_v31 = vpop.f32.mrf.mxu0 }
 0x15b   : > { %v985_v39 = vadd.f32 %v910_v31, %v816_v32 }
 0x15c   : > { %v1319_v33 = vpop.f32.mrf.mxu1  ;;  %v912_v34 = vpop.f32.mrf.mxu0 }
 0x15d   : > { %v986_v41 = vadd.f32 %v912_v34, %v817_v35  ;;  %v1325_v57 = vadd.f32 %v1319_v33, %v1156_v53 }
 0x15e   : > { %v1079_v36 = vpop.f32.mrf.mxu0  ;;  %v5891_v37 = vpop.f32.mrf.mxu1 }
 0x15f   : > { %v1154_v44 = vadd.f32 %v1079_v36, %v985_v39  ;;  %v5759_v39 = vld [vmem:[%s6739_s2 + $0x8] sm:$0xff] }
 0x160   : > { %v1081_v40 = vpop.f32.mrf.mxu0 }
 0x161   : > { %v1155_v47 = vadd.f32 %v1081_v40, %v986_v41 }
 0x162   : > { %v1248_v42 = vpop.f32.mrf.mxu0 }
 0x163   : > { %v1323_v51 = vadd.f32 %v1248_v42, %v1154_v44 }
 0x164   : > { %v1488_v45 = vpop.f32.mrf.mxu1  ;;  %v1250_v46 = vpop.f32.mrf.mxu0 }
 0x165   : > { %v1324_v54 = vadd.f32 %v1250_v46, %v1155_v47  ;;  %v1494_v59 = vadd.f32 %v1488_v45, %v1325_v57  ;;  %v5764_v47 = vld [vmem:[%s6739_s2 + $0x18] sm:$0xff] }
 0x166   : > { %v5896_v48 = vpop.f32.mrf.mxu1  ;;  %v1417_v49 = vpop.f32.mrf.mxu0 }
 0x167   : > { %v1492_v58 = vadd.f32 %v1417_v49, %v1323_v51  ;;  %v5766_v51 = vld [vmem:[%s6739_s2 + $0x20] sm:$0xff] }
 0x168   : > { %v1657_v52 = vpop.f32.mrf.mxu1  ;;  %v1419_v55 = vpop.f32.mrf.mxu0 }
 0x169   : > { %v1493_v60 = vadd.f32 %v1419_v55, %v1324_v54  ;;  %v1663_v62 = vadd.f32 %v1657_v52, %v1494_v59  ;;  %v5768_v55 = vld [vmem:[%s6739_s2 + $0x28] sm:$0xff]  ;;  %v5770_v59 = vld [vmem:[%s6739_s2 + $0x30] sm:$0xff] }
 0x16a   : > { %v5901_v56 = vpop.f32.mrf.mxu1 }
 0x16d   : > { %v1586_v61 = vpop.f32.mrf.mxu0 }
 0x16e   : > { %v1661_v63 = vadd.f32 %v1586_v61, %v1492_v58 }
 0x16f   : > { %v1588_v1 = vpop.f32.mrf.mxu0 }
 0x170   : > { %v1826_v2 = vpop.f32.mrf.mxu1  ;;  %v1662_v4 = vadd.f32 %v1588_v1, %v1493_v60 }
 0x171   : > { %v1832_v5 = vadd.f32 %v1826_v2, %v1663_v62 }
 0x172   : > { %v1755_v6 = vpop.f32.mrf.mxu0  ;;  %v5906_v7 = vpop.f32.mrf.mxu1 }
 0x173   : > { %v1830_v8 = vadd.f32 %v1755_v6, %v1661_v63  ;;  %v1841_v9 = vadd.f32 %v1837_v3, %v1832_v5  ;;  %v5772_v63 = vld [vmem:[%s6739_s2 + $0x38] sm:$0xff] }
 0x174   : > { %v1757_v10 = vpop.f32.mrf.mxu0 }
 0x175   : > { %v6254_v11 = vadd.f32 %v1837_v3, %v1830_v8  ;;  %1845 = vst.msk [vmem:[#allocation2 + $0x10] sm:$0xff] %vm1844_vm11, %v1841_v9  ;;  %v1831_v12 = vadd.f32 %v1757_v10, %v1662_v4  ;;  %v5774_v4 = vld [vmem:[%s6739_s2 + $0x40] sm:$0xff]  ;;  %v5776_v8 = vld [vmem:[%s6739_s2 + $0x48] sm:$0xff]  ;;  %vm6754_vm11 = vcmask 588800  }
 0x177   : > { %v6256_v13 = vadd.f32 %v1837_v3, %v1831_v12  ;;  %v5778_v12 = vld [vmem:[%s6739_s2 + $0x50] sm:$0xff] }
 0x179   : > { %1968 = vmatprep.subr.mxu1 %v6256_v13 }
 0x17a   : > { %1969 = vmatpush1.msra.mxu1 %v6254_v11 }
 0x17b   : > { %5761 = vmatmul.mubr.msk.f32.vlgmr.msra.gmra.mxu1 %vm1860_vm12, %v1848_v15 }
 0x17c   : > { %v6260_v14 = vld [vmem:[#allocation2 + $0x10] sm:$0xff]  ;;  %2171 = vmatprep.mubr.f32.mxu1 %v5969_v0 }
 0x17d   : > { %3221 = vrot.lane.b32.xlu0 %v6260_v14, %s5980_s13  ;;  %3132 = vrot.lane.b32.xlu1 %v6260_v14, %s5981_s14 }
 0x181   : > { %3399 = vrot.lane.b32.xlu0 %v6260_v14, %s6751_s23  ;;  %3310 = vrot.lane.b32.xlu1 %v6260_v14, %s5983_s24 }
 0x185   : > { %3577 = vrot.lane.b32.xlu0 %v6260_v14, %s6752_s25  ;;  %3488 = vrot.lane.b32.xlu1 %v6260_v14, %s5985_s26 }
 0x189   : > { %3755 = vrot.lane.b32.xlu0 %v6260_v14, %s5986_s27  ;;  %3666 = vrot.lane.b32.xlu1 %v6260_v14, %s6749_s28  ;;  %s5993_s28 = smov 89  }
 0x18d   : > { %3844 = vrot.lane.b32.xlu1 %v6260_v14, %s6747_s29  ;;  %2011 = vrot.lane.b32.xlu0 %v6254_v11, %s5972_s16  ;;  %s5994_s29 = smov 88  }
 0x191   : > { %2096 = vrot.lane.b32.xlu0 %v6254_v11, %s5989_s11  ;;  %1853 = vrot.lane.b32.xlu1 %v6254_v11, %s5971_s15 }
 0x195   : > { %2182 = vrot.lane.b32.xlu0 %v6254_v11, %s5990_s12  ;;  %3217 = vrot.lane.b32.xlu1 %v6254_v11, %s5980_s13 }
 0x199   : > { %2268 = vrot.lane.b32.xlu0 %v6254_v11, %s5973_s17  ;;  %3395 = vrot.lane.b32.xlu1 %v6254_v11, %s6751_s23  ;;  %s5991_s23 = smov 107  }
 0x19d   : > { %2353 = vrot.lane.b32.xlu0 %v6254_v11, %s5974_s18  ;;  %3573 = vrot.lane.b32.xlu1 %v6254_v11, %s6752_s25  ;;  %s5992_s25 = smov 106  }
 0x1a1   : > { %2438 = vrot.lane.b32.xlu0 %v6254_v11, %s5975_s19  ;;  %3751 = vrot.lane.b32.xlu1 %v6254_v11, %s5986_s27 }
 0x1a5   : > { %2523 = vrot.lane.b32.xlu0 %v6254_v11, %s5991_s23  ;;  %1855 = vrot.lane.b32.xlu1 %v6256_v13, %s5971_s15 }
 0x1a9   : > { %2609 = vrot.lane.b32.xlu0 %v6254_v11, %s5992_s25  ;;  %2013 = vrot.lane.b32.xlu1 %v6256_v13, %s5972_s16 }
 0x1ad   : > { %2695 = vrot.lane.b32.xlu0 %v6254_v11, %s5976_s20  ;;  %2098 = vrot.lane.b32.xlu1 %v6256_v13, %s5989_s11  ;;  %s6760_s11 = smov 55  }
 0x1b1   : > { %2780 = vrot.lane.b32.xlu0 %v6254_v11, %s5978_s21  ;;  %2184 = vrot.lane.b32.xlu1 %v6256_v13, %s5990_s12  ;;  %s6761_s12 = smov 53  }
 0x1b5   : > { %2865 = vrot.lane.b32.xlu0 %v6254_v11, %s5979_s22  ;;  %2270 = vrot.lane.b32.xlu1 %v6256_v13, %s5973_s17 }
 0x1b9   : > { %2950 = vrot.lane.b32.xlu0 %v6254_v11, %s5993_s28  ;;  %2355 = vrot.lane.b32.xlu1 %v6256_v13, %s5974_s18 }
 0x1bd   : > { %3036 = vrot.lane.b32.xlu0 %v6254_v11, %s5994_s29  ;;  %2440 = vrot.lane.b32.xlu1 %v6256_v13, %s5975_s19 }
 0x1c1   : > { %3128 = vrot.lane.b32.xlu0 %v6254_v11, %s5981_s14  ;;  %2525 = vrot.lane.b32.xlu1 %v6256_v13, %s5991_s23  ;;  %s6762_s23 = smov 71  }
 0x1c5   : > { %3306 = vrot.lane.b32.xlu0 %v6254_v11, %s5983_s24  ;;  %2611 = vrot.lane.b32.xlu1 %v6256_v13, %s5992_s25  ;;  %s5995_s25 = smov 52  }
 0x1c9   : > { %3484 = vrot.lane.b32.xlu0 %v6254_v11, %s5985_s26  ;;  %2697 = vrot.lane.b32.xlu1 %v6256_v13, %s5976_s20 }
 0x1cd   : > { %3662 = vrot.lane.b32.xlu0 %v6254_v11, %s6760_s11  ;;  %2782 = vrot.lane.b32.xlu1 %v6256_v13, %s5978_s21 }
 0x1d1   : > { %3840 = vrot.lane.b32.xlu0 %v6254_v11, %s6761_s12  ;;  %2867 = vrot.lane.b32.xlu1 %v6256_v13, %s5979_s22 }
 0x1d5   : > { %3130 = vrot.lane.b32.xlu0 %v6256_v13, %s5981_s14  ;;  %2952 = vrot.lane.b32.xlu1 %v6256_v13, %s5993_s28  ;;  %s6763_s14 = smov 56   ;;  %s6002_s28 = smov 64  }
 0x1d9   : > { %3308 = vrot.lane.b32.xlu0 %v6256_v13, %s5983_s24  ;;  %3038 = vrot.lane.b32.xlu1 %v6256_v13, %s5994_s29 }
 0x1dd   : > { %3486 = vrot.lane.b32.xlu0 %v6256_v13, %s5985_s26  ;;  %3219 = vrot.lane.b32.xlu1 %v6256_v13, %s5980_s13  ;;  %s6000_s13 = smov 104  }
 0x1e1   : > { %3664 = vrot.lane.b32.xlu0 %v6256_v13, %s6760_s11  ;;  %3397 = vrot.lane.b32.xlu1 %v6256_v13, %s6762_s23  ;;  %s5996_s23 = smov 19  }
 0x1e5   : > { %3842 = vrot.lane.b32.xlu0 %v6256_v13, %s6761_s12  ;;  %3575 = vrot.lane.b32.xlu1 %v6256_v13, %s6763_s14 }
 0x1e9   : > { %3933 = vrot.lane.b32.xlu0 %v6260_v14, %s5995_s25  ;;  %3753 = vrot.lane.b32.xlu1 %v6256_v13, %s5986_s27  ;;  %s6001_s27 = smov 80  }
 0x1ed   : > { %4019 = vperm.xlu0 %5950, %v4016_v16   ;;  %3931 = vrot.lane.b32.xlu1 %v6256_v13, %s5995_s25  ;;  %v5780_v16 = vld [vmem:[%s6739_s2 + $0x58] sm:$0xff] }
 0x1ef   : > { %v6372_v17 = vpop.permute.xlu0 %3221  ;;  %v6374_v18 = vpop.permute.xlu1 %3132 }
 0x1f1   : > { %3929 = vrot.lane.b32.xlu1 %v6254_v11, %s5995_s25 }
 0x1f3   : > { %v6377_v19 = vpop.permute.xlu0 %3399  ;;  %v6379_v20 = vpop.permute.xlu1 %3310 }
 0x1f7   : > { %v6381_v21 = vpop.permute.xlu0 %3577  ;;  %v6383_v22 = vpop.permute.xlu1 %3488 }
 0x1fb   : > { %v6385_v23 = vpop.permute.xlu0 %3755  ;;  %v6387_v24 = vpop.permute.xlu1 %3666 }
 0x1ff   : > { %v6389_v25 = vpop.permute.xlu1 %3844  ;;  %v2012_v26 = vpop.permute.xlu0 %2011 }
 0x203   : > { %v2097_v27 = vpop.permute.xlu0 %2096  ;;  %v1854_v28 = vpop.permute.xlu1 %1853 }
 0x207   : > { %v2183_v29 = vpop.permute.xlu0 %2182  ;;  %v6391_v30 = vpop.permute.xlu1 %3217 }
 0x20b   : > { %v2269_v31 = vpop.permute.xlu0 %2268  ;;  %v6393_v32 = vpop.permute.xlu1 %3395 }
 0x20f   : > { %v2354_v33 = vpop.permute.xlu0 %2353  ;;  %v6395_v34 = vpop.permute.xlu1 %3573 }
 0x213   : > { %v2439_v35 = vpop.permute.xlu0 %2438  ;;  %v6397_v36 = vpop.permute.xlu1 %3751 }
 0x217   : > { %v6399_v37 = vpop.permute.xlu0 %2523  ;;  %v1856_v38 = vpop.permute.xlu1 %1855 }
 0x218   : > { %v1857_v40 = vsel %vm345_vm3, %v1854_v28, %v1856_v38  ;;  %1894 = vmatprep.subr.mxu0 %v1856_v38 }
 0x219   : > { %1895 = vmatpush1.msra.mxu0 %v1857_v40 }
 0x21a   : > { %5760 = vmatmul.mubr.msk.f32.vlgmr.msra.gmra.mxu0 %vm1860_vm12, %v5759_v39 }
 0x21b   : > { %v6406_v41 = vpop.permute.xlu0 %2609  ;;  %v2014_v42 = vpop.permute.xlu1 %2013  ;;  %2085 = vmatprep.mubr.f32.mxu0 %v5969_v0 }
 0x21c   : > { %v2015_v44 = vsel %vm663_vm4, %v2012_v26, %v2014_v42  ;;  %2051 = vmatprep.subr.mxu0 %v2014_v42 }
 0x21d   : > { %2052 = vmatpush1.msra.mxu0 %v2015_v44 }
 0x21e   : > { %5763 = vmatmul.mubr.msk.f32.vlgmr.msra.gmra.mxu0 %vm1860_vm12, %v5762_v43  ;;  %v5786_v43 = vld [vmem:[%s6739_s2 + $0x70] sm:$0xff] }
 0x21f   : > { %v6414_v45 = vpop.permute.xlu0 %2695  ;;  %v2099_v46 = vpop.permute.xlu1 %2098  ;;  %2257 = vmatprep.mubr.f32.mxu0 %v5969_v0 }
 0x220   : > { %v2101_v48 = vsel %vm2100_vm13, %v2097_v27, %v2099_v46  ;;  %2137 = vmatprep.subr.mxu1 %v2099_v46  ;;  %vm3040_vm13 = vcmask 719872  }
 0x221   : > { %2138 = vmatpush1.msra.mxu1 %v2101_v48 }
 0x222   : > { %5765 = vmatmul.mubr.msk.f32.vlgmr.msra.gmra.mxu1 %vm1860_vm12, %v5764_v47 }
 0x223   : > { %v6421_v49 = vpop.permute.xlu0 %2780  ;;  %v2185_v50 = vpop.permute.xlu1 %2184  ;;  %2342 = vmatprep.mubr.f32.mxu1 %v5969_v0 }
 0x224   : > { %v2187_v52 = vsel %vm2186_vm14, %v2183_v29, %v2185_v50  ;;  %2223 = vmatprep.subr.mxu0 %v2185_v50  ;;  %v5782_v29 = vld [vmem:[%s6739_s2 + $0x60] sm:$0xff]  ;;  %vm3490_vm14 = vcmask 572416  }
 0x225   : > { %2224 = vmatpush1.msra.mxu0 %v2187_v52 }
 0x226   : > { %5767 = vmatmul.mubr.msk.f32.vlgmr.msra.gmra.mxu0 %vm1860_vm12, %v5766_v51 }
 0x227   : > { %v6428_v53 = vpop.permute.xlu0 %2865  ;;  %v2271_v54 = vpop.permute.xlu1 %2270  ;;  %2427 = vmatprep.mubr.f32.mxu0 %v5969_v0 }
 0x228   : > { %v2272_v56 = vsel %vm832_vm5, %v2269_v31, %v2271_v54  ;;  %2308 = vmatprep.subr.mxu1 %v2271_v54 }
 0x229   : > { %2309 = vmatpush1.msra.mxu1 %v2272_v56  ;;  %v5796_v56 = vld [vmem:[%s6739_s2 + $0x98] sm:$0xff] }
 0x22a   : > { %5769 = vmatmul.mubr.msk.f32.vlgmr.msra.gmra.mxu1 %vm1860_vm12, %v5768_v55 }
 0x22b   : > { %v6436_v57 = vpop.permute.xlu0 %2950  ;;  %v2356_v58 = vpop.permute.xlu1 %2355  ;;  %2512 = vmatprep.mubr.f32.mxu1 %v5969_v0 }
 0x22c   : > { %v2357_v60 = vsel %vm6759_vm6, %v2354_v33, %v2356_v58  ;;  %2393 = vmatprep.subr.mxu0 %v2356_v58 }
 0x22d   : > { %2394 = vmatpush1.msra.mxu0 %v2357_v60  ;;  %v5800_v60 = vld [vmem:[%s6739_s2 + $0xa8] sm:$0xff] }
 0x22e   : > { %5771 = vmatmul.mubr.msk.f32.vlgmr.msra.gmra.mxu0 %vm1860_vm12, %v5770_v59 }
 0x22f   : > { %v6444_v61 = vpop.permute.xlu0 %3036  ;;  %v2441_v62 = vpop.permute.xlu1 %2440  ;;  %2598 = vmatprep.mubr.f32.mxu0 %v5969_v0 }
 0x230   : > { %v2442_v1 = vsel %vm6758_vm7, %v2439_v35, %v2441_v62  ;;  %2478 = vmatprep.subr.mxu1 %v2441_v62 }
 0x231   : > { %2479 = vmatpush1.msra.mxu1 %v2442_v1 }
 0x232   : > { %5773 = vmatmul.mubr.msk.f32.vlgmr.msra.gmra.mxu1 %vm1860_vm12, %v5772_v63 }
 0x233   : > { %v3129_v2 = vpop.permute.xlu0 %3128  ;;  %v2526_v3 = vpop.permute.xlu1 %2525  ;;  %2684 = vmatprep.mubr.f32.mxu1 %v5969_v0 }
 0x234   : > { %v2528_v5 = vsel %vm2527_vm15, %v6399_v37, %v2526_v3  ;;  %2564 = vmatprep.subr.mxu0 %v2526_v3  ;;  %v5784_v37 = vld [vmem:[%s6739_s2 + $0x68] sm:$0xff]  ;;  %vm3223_vm15 = vcmask 596992  }
 0x235   : > { %2565 = vmatpush1.msra.mxu0 %v2528_v5  ;;  %v5806_v5 = vld [vmem:[%s6739_s2 + $0xc0] sm:$0xff] }
 0x236   : > { %5775 = vmatmul.mubr.msk.f32.vlgmr.msra.gmra.mxu0 %vm1860_vm12, %v5774_v4 }
 0x237   : > { %v3307_v6 = vpop.permute.xlu0 %3306  ;;  %v2612_v7 = vpop.permute.xlu1 %2611  ;;  %2769 = vmatprep.mubr.f32.mxu0 %v5969_v0 }
 0x238   : > { %v2614_v9 = vsel %vm2613_vm0, %v6406_v41, %v2612_v7  ;;  %2650 = vmatprep.subr.mxu1 %v2612_v7  ;;  %vm3668_vm0 = vcmask 449536  }
 0x239   : > { %2651 = vmatpush1.msra.mxu1 %v2614_v9 }
 0x23a   : > { %5777 = vmatmul.mubr.msk.f32.vlgmr.msra.gmra.mxu1 %vm1860_vm12, %v5776_v8 }
 0x23b   : > { %v3485_v10 = vpop.permute.xlu0 %3484  ;;  %v2698_v11 = vpop.permute.xlu1 %2697  ;;  %2854 = vmatprep.mubr.f32.mxu1 %v5969_v0 }
 0x23c   : > { %v2699_v13 = vsel %vm6757_vm8, %v6414_v45, %v2698_v11  ;;  %2735 = vmatprep.subr.mxu0 %v2698_v11  ;;  %v2004_v7 = vpop.f32.mrf.mxu1 }
 0x23d   : > { %2736 = vmatpush1.msra.mxu0 %v2699_v13 }
 0x23e   : > { %5779 = vmatmul.mubr.msk.f32.vlgmr.msra.gmra.mxu0 %vm1860_vm12, %v5778_v12  ;;  %v2006_v9 = vpop.f32.mrf.mxu1 }
 0x23f   : > { %v6471_v14 = vpop.permute.xlu0 %3662  ;;  %v2783_v15 = vpop.permute.xlu1 %2782  ;;  %2939 = vmatprep.mubr.f32.mxu0 %v5969_v0 }
 0x240   : > { %v2784_v26 = vsel %vm6756_vm9, %v6421_v49, %v2783_v15  ;;  %2820 = vmatprep.subr.mxu1 %v2783_v15  ;;  %v5792_v49 = vld [vmem:[%s6739_s2 + $0x88] sm:$0xff] }
 0x241   : > { %2821 = vmatpush1.msra.mxu1 %v2784_v26 }
 0x242   : > { %5781 = vmatmul.mubr.msk.f32.vlgmr.msra.gmra.mxu1 %vm1860_vm12, %v5780_v16 }
 0x243   : > { %v6480_v27 = vpop.permute.xlu0 %3840  ;;  %v2868_v28 = vpop.permute.xlu1 %2867  ;;  %3025 = vmatprep.mubr.f32.mxu1 %v5969_v0 }
 0x244   : > { %v2869_v31 = vsel %vm6755_vm10, %v6428_v53, %v2868_v28  ;;  %2905 = vmatprep.subr.mxu0 %v2868_v28  ;;  %v5790_v53 = vld [vmem:[%s6739_s2 + $0x80] sm:$0xff] }
 0x245   : > { %2906 = vmatpush1.msra.mxu0 %v2869_v31 }
 0x246   : > { %5783 = vmatmul.mubr.msk.f32.vlgmr.msra.gmra.mxu0 %vm1860_vm12, %v5782_v29 }
 0x247   : > { %v3131_v33 = vpop.permute.xlu0 %3130  ;;  %v2953_v35 = vpop.permute.xlu1 %2952  ;;  %3111 = vmatprep.mubr.f32.mxu0 %v5969_v0 }
 0x248   : > { %v2955_v38 = vsel %vm2954_vm2, %v6436_v57, %v2953_v35  ;;  %2991 = vmatprep.subr.mxu1 %v2953_v35  ;;  %v3136_v39 = vsel %vm3134_vm1, %v3131_v33, %v6374_v18  ;;  %v3135_v40 = vsel %vm3134_vm1, %v3129_v2, %v3131_v33  ;;  %v5788_v18 = vld [vmem:[%s6739_s2 + $0x78] sm:$0xff]  ;;  %vm3401_vm1 = vcmask 580608   ;;  %v5794_v57 = vld [vmem:[%s6739_s2 + $0x90] sm:$0xff] }
 0x249   : > { %2992 = vmatpush1.msra.mxu1 %v2955_v38  ;;  %vm3579_vm2 = vcmask 457728   ;;  %v5804_v2 = vld [vmem:[%s6739_s2 + $0xb8] sm:$0xff] }
 0x24a   : > { %5785 = vmatmul.mubr.msk.f32.vlgmr.msra.gmra.mxu1 %vm1860_vm12, %v5784_v37  ;;  %3172 = vmatprep.subr.mxu1 %v3136_v39 }
 0x24b   : > { %v3309_v41 = vpop.permute.xlu0 %3308  ;;  %v3039_v42 = vpop.permute.xlu1 %3038  ;;  %3173 = vmatpush1.msra.mxu1 %v3135_v40  ;;  %3206 = vmatprep.mubr.f32.mxu1 %v5969_v0 }
 0x24c   : > { %v3313_v44 = vsel %vm6754_vm11, %v3307_v6, %v3309_v41  ;;  %v3041_v45 = vsel %vm3040_vm13, %v6444_v61, %v3039_v42  ;;  %3077 = vmatprep.subr.mxu0 %v3039_v42  ;;  %v3314_v46 = vsel %vm6754_vm11, %v3309_v41, %v6379_v20  ;;  %vm3846_vm13 = vcmask 433152   ;;  %v5798_v61 = vld [vmem:[%s6739_s2 + $0xa0] sm:$0xff] }
 0x24d   : > { %3078 = vmatpush1.msra.mxu0 %v3041_v45  ;;  %3350 = vmatprep.subr.mxu1 %v3314_v46  ;;  %vm4822_vm11 = vcmask 220296  }
 0x24e   : > { %5787 = vmatmul.mubr.msk.f32.vlgmr.msra.gmra.mxu0 %vm1860_vm12, %v5786_v43  ;;  %5789 = vmatmul.mubr.msk.f32.vlgmr.msra.gmra.mxu1 %vm1860_vm12, %v5788_v18 }
 0x24f   : > { %3351 = vmatpush1.msra.mxu1 %v3313_v44  ;;  %v3487_v47 = vpop.permute.xlu0 %3486  ;;  %v3220_v48 = vpop.permute.xlu1 %3219  ;;  %3384 = vmatprep.mubr.f32.mxu1 %v5969_v0 }
 0x250   : > { %v3491_v50 = vsel %vm3490_vm14, %v3485_v10, %v3487_v47  ;;  %v3224_v20 = vsel %vm3223_vm15, %v6391_v30, %v3220_v48  ;;  %v3225_v51 = vsel %vm3223_vm15, %v3220_v48, %v6372_v17  ;;  %v3492_v52 = vsel %vm3490_vm14, %v3487_v47, %v6383_v22  ;;  %3295 = vmatprep.mubr.f32.mxu0 %v5969_v0  ;;  %v6524_v30 = vld [vmem:[#allocation4] sm:$0xff] }
 0x251   : > { %3261 = vmatprep.subr.mxu0 %v3225_v51  ;;  %3528 = vmatprep.subr.mxu1 %v3492_v52  ;;  %vm3757_vm14 = vcmask 441344   ;;  %vm3935_vm15 = vcmask 424960  }
 0x252   : > { %3262 = vmatpush1.msra.mxu0 %v3224_v20  ;;  %5793 = vmatmul.mubr.msk.f32.vlgmr.msra.gmra.mxu1 %vm1860_vm12, %v5792_v49 }
 0x253   : > { %3529 = vmatpush1.msra.mxu1 %v3491_v50  ;;  %v3665_v54 = vpop.permute.xlu0 %3664  ;;  %5791 = vmatmul.mubr.msk.f32.vlgmr.msra.gmra.mxu0 %vm1860_vm12, %v5790_v53  ;;  %v3398_v17 = vpop.permute.xlu1 %3397 }
 0x254   : > { %v3402_v22 = vsel %vm3401_vm1, %v6393_v32, %v3398_v17  ;;  %v3403_v0 = vsel %vm3401_vm1, %v3398_v17, %v6377_v19  ;;  %3562 = vmatprep.mubr.f32.mxu1 %v6524_v30  ;;  %v3670_v55 = vsel %vm3668_vm0, %v3665_v54, %v6387_v24  ;;  %v3669_v58 = vsel %vm3668_vm0, %v6471_v14, %v3665_v54 }
 0x255   : > { %3439 = vmatprep.subr.mxu0 %v3403_v0  ;;  %3706 = vmatprep.subr.mxu1 %v3670_v55  ;;  %vm4025_vm0 = vcmask 670720   ;;  %vm4800_vm1 = vcmask 236696  }
 0x256   : > { %3440 = vmatpush1.msra.mxu0 %v3402_v22  ;;  %3473 = vmatprep.mubr.f32.mxu0 %v6524_v30 }
 0x257   : > { %5797 = vmatmul.mubr.msk.f32.vlgmr.msra.gmra.mxu1 %vm1860_vm12, %v5796_v56  ;;  %v3843_v19 = vpop.permute.xlu0 %3842  ;;  %5795 = vmatmul.mubr.msk.f32.vlgmr.msra.gmra.mxu0 %vm1860_vm12, %v5794_v57  ;;  %v3576_v24 = vpop.permute.xlu1 %3575 }
 0x258   : > { %3707 = vmatpush1.msra.mxu1 %v3669_v58  ;;  %v3580_v32 = vsel %vm3579_vm2, %v6395_v34, %v3576_v24  ;;  %v3581_v59 = vsel %vm3579_vm2, %v3576_v24, %v6381_v21  ;;  %3740 = vmatprep.mubr.f32.mxu1 %v6524_v30  ;;  %v3847_v62 = vsel %vm3846_vm13, %v6480_v27, %v3843_v19  ;;  %vm4814_vm2 = vcmask 72704  }
 0x259   : > { %3617 = vmatprep.subr.mxu0 %v3581_v59  ;;  %v3848_v63 = vsel %vm3846_vm13, %v3843_v19, %v6389_v25  ;;  %3651 = vmatprep.mubr.f32.mxu0 %v6524_v30  ;;  %v5802_v25 = vld [vmem:[%s6739_s2 + $0xb0] sm:$0xff]  ;;  %vm4802_vm13 = vcmask 384296  }
 0x25a   : > { %3884 = vmatprep.subr.mxu1 %v3848_v63  ;;  %3618 = vmatpush1.msra.mxu0 %v3580_v32 }
 0x25b   : > { %5801 = vmatmul.mubr.msk.f32.vlgmr.msra.gmra.mxu1 %vm1860_vm12, %v5800_v60  ;;  %5799 = vmatmul.mubr.msk.f32.vlgmr.msra.gmra.mxu0 %vm1860_vm12, %v5798_v61  ;;  %v3754_v21 = vpop.permute.xlu1 %3753  ;;  %v3934_v3 = vpop.permute.xlu0 %3933 }
 0x25c   : > { %3885 = vmatpush1.msra.mxu1 %v3847_v62  ;;  %v3758_v34 = vsel %vm3757_vm14, %v6397_v36, %v3754_v21  ;;  %v3759_v1 = vsel %vm3757_vm14, %v3754_v21, %v6385_v23  ;;  %3829 = vmatprep.mubr.f32.mxu0 %v6524_v30  ;;  %vm4804_vm14 = vcmask 531896  }
 0x25d   : > { %3795 = vmatprep.subr.mxu0 %v3759_v1  ;;  %3918 = vmatprep.mubr.f32.mxu1 %v6524_v30 }
 0x25e   : > { %3796 = vmatpush1.msra.mxu0 %v3758_v34 }
 0x25f   : > { %5803 = vmatmul.mubr.msk.f32.vlgmr.msra.gmra.mxu0 %vm1860_vm12, %v5802_v25  ;;  %v3932_v36 = vpop.permute.xlu1 %3931  ;;  %5805 = vmatmul.mubr.msk.f32.vlgmr.msra.gmra.mxu1 %vm1860_vm12, %v5804_v2 }
 0x260   : > { %v3937_v23 = vsel %vm3935_vm15, %v3932_v36, %v3934_v3  ;;  %4007 = vmatprep.mubr.f32.mxu0 %v6524_v30  ;;  %4112 = vmatprep.mubr.f32.mxu1 %v6524_v30 }
 0x261   : > { %3973 = vmatprep.subr.mxu0 %v3937_v23 }
 0x263   : > { %v3930_v4 = vpop.permute.xlu1 %3929 }
 0x264   : > { %v3936_v6 = vsel %vm3935_vm15, %v3930_v4, %v3932_v36  ;;  %vm4819_vm15 = vcmask 154624  }
 0x265   : > { %3974 = vmatpush1.msra.mxu0 %v3936_v6 }
 0x266   : > { %5807 = vmatmul.mubr.msk.f32.vlgmr.msra.gmra.mxu0 %vm1860_vm12, %v5806_v5 }
 0x267   : > { %4186 = vmatprep.mubr.f32.mxu0 %v6524_v30 }
 0x2da   : > { %v1930_v8 = vpop.f32.mrf.mxu0 }
 0x2db   : > { %v2005_v10 = vadd.f32 %v2004_v7, %v1930_v8 }
 0x2dc   : > { %v1932_v11 = vpop.f32.mrf.mxu0 }
 0x2dd   : > { %v2007_v12 = vadd.f32 %v2006_v9, %v1932_v11 }
 0x2de   : > { %v2087_v13 = vpop.f32.mrf.mxu0 }
 0x2df   : > { %v2092_v14 = vadd.f32 %v2087_v13, %v2005_v10 }
 0x2e0   : > { %v2089_v15 = vpop.f32.mrf.mxu0 }
 0x2e1   : > { %v2093_v16 = vadd.f32 %v2089_v15, %v2007_v12 }
 0x2e2   : > { %v2173_v26 = vpop.f32.mrf.mxu1 }
 0x2e3   : > { %v2178_v27 = vadd.f32 %v2173_v26, %v2092_v14 }
 0x2e4   : > { %v2175_v28 = vpop.f32.mrf.mxu1 }
 0x2e5   : > { %v2179_v29 = vadd.f32 %v2175_v28, %v2093_v16 }
 0x2e6   : > { %v2259_v31 = vpop.f32.mrf.mxu0 }
 0x2e7   : > { %v2264_v33 = vadd.f32 %v2259_v31, %v2178_v27 }
 0x2e8   : > { %v2261_v35 = vpop.f32.mrf.mxu0 }
 0x2e9   : > { %v2265_v37 = vadd.f32 %v2261_v35, %v2179_v29 }
 0x2ea   : > { %v2344_v38 = vpop.f32.mrf.mxu1 }
 0x2eb   : > { %v2349_v39 = vadd.f32 %v2344_v38, %v2264_v33 }
 0x2ec   : > { %v2346_v40 = vpop.f32.mrf.mxu1 }
 0x2ed   : > { %v2350_v41 = vadd.f32 %v2346_v40, %v2265_v37 }
 0x2ee   : > { %v2429_v42 = vpop.f32.mrf.mxu0 }
 0x2ef   : > { %v2434_v43 = vadd.f32 %v2429_v42, %v2349_v39 }
 0x2f0   : > { %v2431_v18 = vpop.f32.mrf.mxu0 }
 0x2f1   : > { %v2435_v44 = vadd.f32 %v2431_v18, %v2350_v41 }
 0x2f2   : > { %v2514_v45 = vpop.f32.mrf.mxu1 }
 0x2f3   : > { %v2519_v46 = vadd.f32 %v2514_v45, %v2434_v43 }
 0x2f4   : > { %v2516_v47 = vpop.f32.mrf.mxu1 }
 0x2f5   : > { %v2520_v48 = vadd.f32 %v2516_v47, %v2435_v44 }
 0x2f6   : > { %v2600_v49 = vpop.f32.mrf.mxu0 }
 0x2f7   : > { %v2605_v50 = vadd.f32 %v2600_v49, %v2519_v46 }
 0x2f8   : > { %v2602_v20 = vpop.f32.mrf.mxu0 }
 0x2f9   : > { %v2606_v51 = vadd.f32 %v2602_v20, %v2520_v48 }
 0x2fa   : > { %v2686_v52 = vpop.f32.mrf.mxu1 }
 0x2fb   : > { %v2691_v53 = vadd.f32 %v2686_v52, %v2605_v50 }
 0x2fc   : > { %v2688_v54 = vpop.f32.mrf.mxu1 }
 0x2fd   : > { %v2692_v17 = vadd.f32 %v2688_v54, %v2606_v51  ;;  %v4020_v51 = vpop.permute.xlu0 %4019 }
 0x2fe   : > { %v2771_v22 = vpop.f32.mrf.mxu0 }
 0x2ff   : > { %v2776_v0 = vadd.f32 %v2771_v22, %v2691_v53 }
 0x300   : > { %v2773_v55 = vpop.f32.mrf.mxu0 }
 0x301   : > { %v2777_v56 = vadd.f32 %v2773_v55, %v2692_v17  ;;  %v4788_v55 = vld [vmem:[%s6744_s7] sm:$0xff] }
 0x302   : > { %v2856_v57 = vpop.f32.mrf.mxu1 }
 0x303   : > { %v2861_v58 = vadd.f32 %v2856_v57, %v2776_v0  ;;  %v4033_v0 = vld [vmem:[%s6740_s3] sm:$0xff] }
 0x304   : > { %v2858_v19 = vpop.f32.mrf.mxu1 }
 0x305   : > { %v2862_v24 = vadd.f32 %v2858_v19, %v2777_v56 }
 0x306   : > { %v2941_v32 = vpop.f32.mrf.mxu0 }
 0x307   : > { %v2946_v59 = vadd.f32 %v2941_v32, %v2861_v58 }
 0x308   : > { %v2943_v60 = vpop.f32.mrf.mxu0 }
 0x309   : > { %v2947_v61 = vadd.f32 %v2943_v60, %v2862_v24  ;;  %v5808_v24 = vld [vmem:[%s6740_s3 + $0x8] sm:$0xff] }
 0x30a   : > { %v3027_v62 = vpop.f32.mrf.mxu1 }
 0x30b   : > { %v3032_v63 = vadd.f32 %v3027_v62, %v2946_v59 }
 0x30c   : > { %v3029_v21 = vpop.f32.mrf.mxu1 }
 0x30d   : > { %v3033_v34 = vadd.f32 %v3029_v21, %v2947_v61  ;;  %v5811_v61 = vld [vmem:[%s6740_s3 + $0x10] sm:$0xff]  ;;  %v5813_v21 = vld [vmem:[%s6740_s3 + $0x18] sm:$0xff] }
 0x30e   : > { %v3113_v1 = vpop.f32.mrf.mxu0  ;;  %v3208_v25 = vpop.f32.mrf.mxu1 }
 0x30f   : > { %v3118_v2 = vadd.f32 %v3113_v1, %v3032_v63 }
 0x310   : > { %v3115_v3 = vpop.f32.mrf.mxu0  ;;  %v3210_v36 = vpop.f32.mrf.mxu1 }
 0x311   : > { %v3119_v23 = vadd.f32 %v3115_v3, %v3033_v34  ;;  %v3213_v4 = vadd.f32 %v3208_v25, %v3118_v2  ;;  %v5815_v2 = vld [vmem:[%s6740_s3 + $0x20] sm:$0xff] }
 0x312   : > { %v3386_v5 = vpop.f32.mrf.mxu1 }
 0x313   : > { %v3214_v6 = vadd.f32 %v3210_v36, %v3119_v23  ;;  %v3297_v7 = vpop.f32.mrf.mxu0 }
 0x314   : > { %v3302_v8 = vadd.f32 %v3297_v7, %v3213_v4  ;;  %v3388_v9 = vpop.f32.mrf.mxu1  ;;  %v5817_v4 = vld [vmem:[%s6740_s3 + $0x28] sm:$0xff]  ;;  %v5819_v7 = vld [vmem:[%s6740_s3 + $0x30] sm:$0xff] }
 0x315   : > { %v3299_v10 = vpop.f32.mrf.mxu0 }
 0x316   : > { %v3303_v11 = vadd.f32 %v3299_v10, %v3214_v6  ;;  %v3391_v12 = vadd.f32 %v3386_v5, %v3302_v8 }
 0x317   : > { %v3475_v13 = vpop.f32.mrf.mxu0  ;;  %v3564_v14 = vpop.f32.mrf.mxu1 }
 0x318   : > { %v3392_v15 = vadd.f32 %v3388_v9, %v3303_v11  ;;  %v3480_v16 = vadd.f32 %v3475_v13, %v3391_v12  ;;  %v5821_v11 = vld [vmem:[%s6740_s3 + $0x38] sm:$0xff] }
 0x319   : > { %v3477_v26 = vpop.f32.mrf.mxu0  ;;  %v3566_v27 = vpop.f32.mrf.mxu1 }
 0x31a   : > { %v3481_v28 = vadd.f32 %v3477_v26, %v3392_v15  ;;  %v3569_v29 = vadd.f32 %v3564_v14, %v3480_v16  ;;  %v5823_v15 = vld [vmem:[%s6740_s3 + $0x40] sm:$0xff] }
 0x31b   : > { %v3653_v31 = vpop.f32.mrf.mxu0  ;;  %v3742_v33 = vpop.f32.mrf.mxu1 }
 0x31c   : > { %v3570_v35 = vadd.f32 %v3566_v27, %v3481_v28  ;;  %v3658_v37 = vadd.f32 %v3653_v31, %v3569_v29 }
 0x31d   : > { %v3655_v38 = vpop.f32.mrf.mxu0  ;;  %v3744_v39 = vpop.f32.mrf.mxu1 }
 0x31e   : > { %v3659_v40 = vadd.f32 %v3655_v38, %v3570_v35  ;;  %v3747_v41 = vadd.f32 %v3742_v33, %v3658_v37 }
 0x31f   : > { %v3831_v42 = vpop.f32.mrf.mxu0  ;;  %v3920_v18 = vpop.f32.mrf.mxu1 }
 0x320   : > { %v3748_v43 = vadd.f32 %v3744_v39, %v3659_v40  ;;  %v3836_v44 = vadd.f32 %v3831_v42, %v3747_v41 }
 0x321   : > { %v3833_v45 = vpop.f32.mrf.mxu0  ;;  %v3922_v47 = vpop.f32.mrf.mxu1 }
 0x322   : > { %v3837_v46 = vadd.f32 %v3833_v45, %v3748_v43  ;;  %v3925_v48 = vadd.f32 %v3920_v18, %v3836_v44 }
 0x324   : > { %v3926_v50 = vadd.f32 %v3922_v47, %v3837_v46 }
 0x326   : > { %v4009_v49 = vpop.f32.mrf.mxu0 }
 0x327   : > { %v4014_v20 = vadd.f32 %v4009_v49, %v3925_v48 }
 0x328   : > { %v4011_v52 = vpop.f32.mrf.mxu0 }
 0x329   : > { %v4022_v53 = vadd.f32 %v4020_v51, %v4014_v20  ;;  %v4015_v54 = vadd.f32 %v4011_v52, %v3926_v50 }
 0x32b   : > { %v4023_v17 = vadd.f32 %v4020_v51, %v4015_v54  ;;  %4038 = vrot.lane.b32.xlu1 %v4022_v53, %s5971_s15 }
 0x32d   : > { %4026 = vst.msk [vmem:[#allocation3 + $0x8] sm:$0xff] %vm4025_vm0, %v4023_v17  ;;  %vm4806_vm0 = vcmask 679496  }
 0x32f   : > { %4195 = vrot.lane.b32.xlu1 %v4022_v53, %s5972_s16 }
 0x333   : > { %4280 = vrot.lane.b32.xlu1 %v4022_v53, %s5973_s17 }
 0x334   : > { %v4032_v22 = vld [vmem:[#allocation3 + $0x8] sm:$0xff] }
 0x335   : > { %4040 = vrot.lane.b32.xlu0 %v4032_v22, %s5971_s15  ;;  %4152 = vmatprep.subr.mxu0 %v4032_v22 }
 0x336   : > { %4153 = vmatpush1.msra.mxu0 %v4022_v53 }
 0x337   : > { %4365 = vrot.lane.b32.xlu1 %v4022_v53, %s5974_s18  ;;  %5810 = vmatmul.mubr.msk.f32.vlgmr.msra.gmra.mxu0 %vm1860_vm12, %v4033_v0 }
 0x338   : > { %4354 = vmatprep.mubr.f32.mxu0 %v6524_v30 }
 0x339   : > { %4197 = vrot.lane.b32.xlu0 %v4032_v22, %s5972_s16 }
 0x33b   : > { %4450 = vrot.lane.b32.xlu1 %v4022_v53, %s5975_s19 }
 0x33d   : > { %4282 = vrot.lane.b32.xlu0 %v4032_v22, %s5973_s17 }
 0x33f   : > { %4535 = vrot.lane.b32.xlu1 %v4022_v53, %s5976_s20 }
 0x341   : > { %4367 = vrot.lane.b32.xlu0 %v4032_v22, %s5974_s18 }
 0x343   : > { %4620 = vrot.lane.b32.xlu1 %v4022_v53, %s5978_s21 }
 0x345   : > { %4452 = vrot.lane.b32.xlu0 %v4032_v22, %s5975_s19 }
 0x347   : > { %4705 = vrot.lane.b32.xlu1 %v4022_v53, %s5979_s22 }
 0x349   : > { %4537 = vrot.lane.b32.xlu0 %v4032_v22, %s5976_s20 }
 0x34b   : > { %4791 = vperm.xlu1 %5951, %v4788_v55  }
 0x34d   : > { %4622 = vrot.lane.b32.xlu0 %v4032_v22, %s5978_s21 }
 0x351   : > { %4707 = vrot.lane.b32.xlu0 %v4032_v22, %s5979_s22 }
 0x39d   : > { %v4039_v56 = vpop.permute.xlu1 %4038 }
 0x3a1   : > { %v4196_v57 = vpop.permute.xlu1 %4195 }
 0x3a5   : > { %v4281_v58 = vpop.permute.xlu1 %4280 }
 0x3a7   : > { %v4041_v19 = vpop.permute.xlu0 %4040 }
 0x3a8   : > { %v4042_v32 = vsel %vm345_vm3, %v4039_v56, %v4041_v19  ;;  %4078 = vmatprep.subr.mxu1 %v4041_v19 }
 0x3a9   : > { %4079 = vmatpush1.msra.mxu1 %v4042_v32  ;;  %v4366_v60 = vpop.permute.xlu1 %4365 }
 0x3aa   : > { %5809 = vmatmul.mubr.msk.f32.vlgmr.msra.gmra.mxu1 %vm1860_vm12, %v5808_v24 }
 0x3ab   : > { %v4198_v59 = vpop.permute.xlu0 %4197  ;;  %4269 = vmatprep.mubr.f32.mxu1 %v6524_v30 }
 0x3ac   : > { %v4199_v62 = vsel %vm663_vm4, %v4196_v57, %v4198_v59  ;;  %4235 = vmatprep.subr.mxu1 %v4198_v59 }
 0x3ad   : > { %4236 = vmatpush1.msra.mxu1 %v4199_v62  ;;  %v4451_v1 = vpop.permute.xlu1 %4450 }
 0x3ae   : > { %5812 = vmatmul.mubr.msk.f32.vlgmr.msra.gmra.mxu1 %vm1860_vm12, %v5811_v61 }
 0x3af   : > { %v4283_v63 = vpop.permute.xlu0 %4282  ;;  %4439 = vmatprep.mubr.f32.mxu1 %v6524_v30 }
 0x3b0   : > { %v4284_v34 = vsel %vm832_vm5, %v4281_v58, %v4283_v63  ;;  %4320 = vmatprep.subr.mxu0 %v4283_v63  ;;  %v4831_v63 = vld [vmem:[%s6741_s4] sm:$0x7] }
 0x3b1   : > { %4321 = vmatpush1.msra.mxu0 %v4284_v34  ;;  %v4536_v23 = vpop.permute.xlu1 %4535  ;;  %v5586_v34 = vld [vmem:[%s6745_s8] sm:$0x7] }
 0x3b2   : > { %5814 = vmatmul.mubr.msk.f32.vlgmr.msra.gmra.mxu0 %vm1860_vm12, %v5813_v21 }
 0x3b3   : > { %v4368_v25 = vpop.permute.xlu0 %4367  ;;  %4524 = vmatprep.mubr.f32.mxu0 %v6524_v30 }
 0x3b4   : > { %v4369_v3 = vsel %vm6759_vm6, %v4366_v60, %v4368_v25  ;;  %4405 = vmatprep.subr.mxu1 %v4368_v25  ;;  %vm4812_vm6 = vcmask 1048568  }
 0x3b5   : > { %4406 = vmatpush1.msra.mxu1 %v4369_v3  ;;  %v4621_v9 = vpop.permute.xlu1 %4620 }
 0x3b6   : > { %5816 = vmatmul.mubr.msk.f32.vlgmr.msra.gmra.mxu1 %vm1860_vm12, %v5815_v2  ;;  %v5825_v2 = vld [vmem:[%s6741_s4 + $0x4] sm:$0x7] }
 0x3b7   : > { %v4453_v36 = vpop.permute.xlu0 %4452  ;;  %4609 = vmatprep.mubr.f32.mxu1 %v6524_v30 }
 0x3b8   : > { %v4454_v5 = vsel %vm6758_vm7, %v4451_v1, %v4453_v36  ;;  %4490 = vmatprep.subr.mxu0 %v4453_v36  ;;  %vm4827_vm7 = vcmask 515496  }
 0x3b9   : > { %4491 = vmatpush1.msra.mxu0 %v4454_v5  ;;  %v4706_v13 = vpop.permute.xlu1 %4705 }
 0x3ba   : > { %5818 = vmatmul.mubr.msk.f32.vlgmr.msra.gmra.mxu0 %vm1860_vm12, %v5817_v4  ;;  %v5828_v4 = vld [vmem:[%s6741_s4 + $0x8] sm:$0x7] }
 0x3bb   : > { %v4538_v6 = vpop.permute.xlu0 %4537  ;;  %4694 = vmatprep.mubr.f32.mxu0 %v6524_v30 }
 0x3bc   : > { %v4539_v8 = vsel %vm6757_vm8, %v4536_v23, %v4538_v6  ;;  %4575 = vmatprep.subr.mxu1 %v4538_v6  ;;  %vm4810_vm8 = vcmask 974696  }
 0x3bd   : > { %4576 = vmatpush1.msra.mxu1 %v4539_v8  ;;  %v5830_v8 = vld [vmem:[%s6741_s4 + $0xc] sm:$0x7] }
 0x3be   : > { %5820 = vmatmul.mubr.msk.f32.vlgmr.msra.gmra.mxu1 %vm1860_vm12, %v5819_v7 }
 0x3bf   : > { %v4623_v10 = vpop.permute.xlu0 %4622  ;;  %4779 = vmatprep.mubr.f32.mxu1 %v6524_v30 }
 0x3c0   : > { %v4624_v12 = vsel %vm6756_vm9, %v4621_v9, %v4623_v10  ;;  %4660 = vmatprep.subr.mxu0 %v4623_v10  ;;  %vm4825_vm9 = vcmask 367896  }
 0x3c1   : > { %4661 = vmatpush1.msra.mxu0 %v4624_v12  ;;  %v5832_v12 = vld [vmem:[%s6741_s4 + $0x10] sm:$0x7] }
 0x3c2   : > { %5822 = vmatmul.mubr.msk.f32.vlgmr.msra.gmra.mxu0 %vm1860_vm12, %v5821_v11 }
 0x3c3   : > { %v4708_v14 = vpop.permute.xlu0 %4707  ;;  %4910 = vmatprep.mubr.f32.mxu0 %v6524_v30 }
 0x3c4   : > { %v4709_v16 = vsel %vm6755_vm10, %v4706_v13, %v4708_v14  ;;  %4745 = vmatprep.subr.mxu1 %v4708_v14  ;;  %vm4808_vm10 = vcmask 827096  }
 0x3c5   : > { %4746 = vmatpush1.msra.mxu1 %v4709_v16  ;;  %v5834_v16 = vld [vmem:[%s6741_s4 + $0x14] sm:$0x7] }
 0x3c6   : > { %5824 = vmatmul.mubr.msk.f32.vlgmr.msra.gmra.mxu1 %vm1860_vm12, %v5823_v15  ;;  %v4792_v55 = vpop.permute.xlu1 %4791 }
 0x3c7   : > { %4984 = vmatprep.mubr.f32.mxu1 %v6524_v30 }
 0x3f7   : > { %v4188_v27 = vpop.f32.mrf.mxu0 }
 0x3f9   : > { %v4190_v31 = vpop.f32.mrf.mxu0 }
 0x46a   : > { %v4114_v26 = vpop.f32.mrf.mxu1 }
 0x46b   : > { %v4189_v29 = vadd.f32 %v4188_v27, %v4114_v26 }
 0x46c   : > { %v4116_v28 = vpop.f32.mrf.mxu1 }
 0x46d   : > { %v4191_v35 = vadd.f32 %v4190_v31, %v4116_v28 }
 0x46e   : > { %v4271_v33 = vpop.f32.mrf.mxu1 }
 0x46f   : > { %v4276_v37 = vadd.f32 %v4271_v33, %v4189_v29  ;;  %v5836_v29 = vld [vmem:[%s6741_s4 + $0x18] sm:$0x7] }
 0x470   : > { %v4273_v38 = vpop.f32.mrf.mxu1 }
 0x471   : > { %v4277_v40 = vadd.f32 %v4273_v38, %v4191_v35 }
 0x472   : > { %v4356_v39 = vpop.f32.mrf.mxu0 }
 0x473   : > { %v4361_v41 = vadd.f32 %v4356_v39, %v4276_v37  ;;  %v5838_v37 = vld [vmem:[%s6741_s4 + $0x1c] sm:$0x7] }
 0x474   : > { %v4358_v42 = vpop.f32.mrf.mxu0 }
 0x475   : > { %v4362_v18 = vadd.f32 %v4358_v42, %v4277_v40 }
 0x476   : > { %v4441_v43 = vpop.f32.mrf.mxu1 }
 0x477   : > { %v4446_v44 = vadd.f32 %v4441_v43, %v4361_v41  ;;  %v5840_v41 = vld [vmem:[%s6741_s4 + $0x20] sm:$0x7] }
 0x478   : > { %v4443_v45 = vpop.f32.mrf.mxu1 }
 0x479   : > { %v4447_v47 = vadd.f32 %v4443_v45, %v4362_v18 }
 0x47a   : > { %v4526_v46 = vpop.f32.mrf.mxu0 }
 0x47b   : > { %v4531_v48 = vadd.f32 %v4526_v46, %v4446_v44 }
 0x47c   : > { %v4528_v49 = vpop.f32.mrf.mxu0 }
 0x47d   : > { %v4532_v20 = vadd.f32 %v4528_v49, %v4447_v47 }
 0x47e   : > { %v4611_v50 = vpop.f32.mrf.mxu1 }
 0x47f   : > { %v4616_v51 = vadd.f32 %v4611_v50, %v4531_v48 }
 0x480   : > { %v4613_v52 = vpop.f32.mrf.mxu1 }
 0x481   : > { %v4617_v17 = vadd.f32 %v4613_v52, %v4532_v20 }
 0x482   : > { %v4696_v53 = vpop.f32.mrf.mxu0 }
 0x483   : > { %v4701_v22 = vadd.f32 %v4696_v53, %v4616_v51 }
 0x484   : > { %v4698_v54 = vpop.f32.mrf.mxu0 }
 0x485   : > { %v4702_v56 = vadd.f32 %v4698_v54, %v4617_v17 }
 0x486   : > { %v4781_v0 = vpop.f32.mrf.mxu1 }
 0x487   : > { %v4786_v57 = vadd.f32 %v4781_v0, %v4701_v22 }
 0x488   : > { %v4783_v58 = vpop.f32.mrf.mxu1 }
 0x489   : > { %v4787_v19 = vadd.f32 %v4783_v58, %v4702_v56  ;;  %v4794_v24 = vadd.f32 %v4792_v55, %v4786_v57 }
 0x48b   : > { %v4795_v32 = vadd.f32 %v4792_v55, %v4787_v19  ;;  %4797 = vrot.lane.b32.xlu0 %v4794_v24, %s5996_s23 }
 0x48d   : > { %4817 = vrot.lane.b32.xlu1 %v4795_v32, %s5996_s23 }
 0x4fd   : > { %v4798_v59 = vpop.permute.xlu0 %4797 }
 0x4fe   : > { %4801 = vst.msk [vmem:[#allocation4] sm:$0xff] %vm4800_vm1, %v4798_v59  ;;  %vm5620_vm1 = vcmask 485776  }
 0x4ff   : > { %4815 = vst.msk [vmem:[#allocation4 + $0x8] sm:$0xff] %vm4814_vm2, %v4798_v59  ;;  %v4818_v60 = vpop.permute.xlu1 %4817  ;;  %vm5625_vm2 = vcmask 567776  }
 0x500   : > { %4803 = vst.msk [vmem:[#allocation4] sm:$0xff] %vm4802_vm13, %v4798_v59  ;;  %v4820_v61 = vsel %vm4819_vm15, %v4798_v59, %v4818_v60  ;;  %vm5634_vm13 = vcmask 649776   ;;  %vm5639_vm15 = vcmask 731776  }
 0x501   : > { %4805 = vst.msk [vmem:[#allocation4] sm:$0xff] %vm4804_vm14, %v4798_v59  ;;  %vm6769_vm14 = vcmask 588800  }
 0x502   : > { %4807 = vst.msk [vmem:[#allocation4] sm:$0xff] %vm4806_vm0, %v4798_v59  ;;  %vm5644_vm0 = vcmask 813776  }
 0x503   : > { %4823 = vst.msk [vmem:[#allocation4 + $0x8] sm:$0xff] %vm4822_vm11, %v4820_v61  ;;  %vm5615_vm11 = vcmask 403776  }
 0x504   : > { %4809 = vst.msk [vmem:[#allocation4] sm:$0xff] %vm4808_vm10, %v4798_v59  ;;  %vm5605_vm10 = vcmask 239776  }
 0x505   : > { %4826 = vst.msk [vmem:[#allocation4 + $0x8] sm:$0xff] %vm4825_vm9, %v4818_v60  ;;  %vm5600_vm9 = vcmask 157776  }
 0x506   : > { %4811 = vst.msk [vmem:[#allocation4] sm:$0xff] %vm4810_vm8, %v4798_v59  ;;  %vm5594_vm8 = vcmask 75776  }
 0x507   : > { %4828 = vst.msk [vmem:[#allocation4 + $0x8] sm:$0xff] %vm4827_vm7, %v4818_v60  ;;  %vm6768_vm7 = vcmask 736256  }
 0x508   : > { %4813 = vst.msk [vmem:[#allocation4] sm:$0xff] %vm4812_vm6, %v4798_v59  ;;  %vm6767_vm6 = vcmask 744448  }
 0x50e   : > { %v4830_v62 = vld [vmem:[#allocation4 + $0x8] sm:$0xff] }
 0x50f   : > { %4838 = vrot.lane.b32.xlu1 %v4830_v62, %s5971_s15  ;;  %4950 = vmatprep.subr.mxu1 %v4830_v62  ;;  %v4829_v21 = vld [vmem:[#allocation4] sm:$0xff] }
 0x510   : > { %4836 = vrot.lane.b32.xlu0 %v4829_v21, %s5971_s15  ;;  %4951 = vmatpush1.msra.mxu1 %v4829_v21 }
 0x511   : > { %5827 = vmatmul.mubr.msk.f32.vlgmr.msra.gmra.mxu1 %vm1860_vm12, %v4831_v63 }
 0x512   : > { %5152 = vmatprep.mubr.f32.mxu1 %v6524_v30 }
 0x513   : > { %4995 = vrot.lane.b32.xlu1 %v4830_v62, %s5972_s16 }
 0x514   : > { %4993 = vrot.lane.b32.xlu0 %v4829_v21, %s5972_s16 }
 0x517   : > { %5080 = vrot.lane.b32.xlu1 %v4830_v62, %s5973_s17 }
 0x518   : > { %5078 = vrot.lane.b32.xlu0 %v4829_v21, %s5973_s17  ;;  %s5705_s17 = sshll.u32 %s6771_s10, 2  ;;  %s5999_s10 = smov 96  }
 0x51b   : > { %5165 = vrot.lane.b32.xlu1 %v4830_v62, %s5974_s18 }
 0x51c   : > { %5163 = vrot.lane.b32.xlu0 %v4829_v21, %s5974_s18 }
 0x51f   : > { %5250 = vrot.lane.b32.xlu1 %v4830_v62, %s5975_s19 }
 0x520   : > { %5248 = vrot.lane.b32.xlu0 %v4829_v21, %s5975_s19 }
 0x523   : > { %5335 = vrot.lane.b32.xlu1 %v4830_v62, %s5976_s20 }
 0x524   : > { %5333 = vrot.lane.b32.xlu0 %v4829_v21, %s5976_s20  ;;  %s6717_s20 = scalar_lea.vmem %s6746_s9, %s5705_s17 }
 0x527   : > { %5420 = vrot.lane.b32.xlu1 %v4830_v62, %s5978_s21 }
 0x528   : > { %5418 = vrot.lane.b32.xlu0 %v4829_v21, %s5978_s21  ;;  %s5997_s21 = smov 112  }
 0x52b   : > { %5505 = vrot.lane.b32.xlu1 %v4830_v62, %s5979_s22 }
 0x52c   : > { %5503 = vrot.lane.b32.xlu0 %v4829_v21, %s5979_s22  ;;  %s5998_s22 = smov 120  }
 0x530   : > { %5589 = vperm.xlu0 %5950, %v5586_v34  }
 0x581   : > { %v4839_v1 = vpop.permute.xlu1 %4838 }
 0x582   : > { %v4837_v25 = vpop.permute.xlu0 %4836  ;;  %4876 = vmatprep.subr.mxu0 %v4839_v1 }
 0x583   : > { %v4840_v3 = vsel %vm345_vm3, %v4837_v25, %v4839_v1  ;;  %vm6764_vm3 = vcmask 891904  }
 0x584   : > { %4877 = vmatpush1.msra.mxu0 %v4840_v3 }
 0x585   : > { %v4996_v36 = vpop.permute.xlu1 %4995  ;;  %5826 = vmatmul.mubr.msk.f32.vlgmr.msra.gmra.mxu0 %vm1860_vm12, %v5825_v2 }
 0x586   : > { %v4994_v23 = vpop.permute.xlu0 %4993  ;;  %5033 = vmatprep.subr.mxu0 %v4996_v36  ;;  %5067 = vmatprep.mubr.f32.mxu0 %v6524_v30 }
 0x587   : > { %v4997_v5 = vsel %vm663_vm4, %v4994_v23, %v4996_v36  ;;  %vm6765_vm4 = vcmask 883712  }
 0x588   : > { %5034 = vmatpush1.msra.mxu0 %v4997_v5 }
 0x589   : > { %v5081_v6 = vpop.permute.xlu1 %5080  ;;  %5829 = vmatmul.mubr.msk.f32.vlgmr.msra.gmra.mxu0 %vm1860_vm12, %v5828_v4 }
 0x58a   : > { %v5079_v7 = vpop.permute.xlu0 %5078  ;;  %5118 = vmatprep.subr.mxu1 %v5081_v6  ;;  %5237 = vmatprep.mubr.f32.mxu0 %v6524_v30 }
 0x58b   : > { %v5082_v9 = vsel %vm832_vm5, %v5079_v7, %v5081_v6  ;;  %vm6766_vm5 = vcmask 752640  }
 0x58c   : > { %5119 = vmatpush1.msra.mxu1 %v5082_v9 }
 0x58d   : > { %v5166_v10 = vpop.permute.xlu1 %5165  ;;  %5831 = vmatmul.mubr.msk.f32.vlgmr.msra.gmra.mxu1 %vm1860_vm12, %v5830_v8 }
 0x58e   : > { %v5164_v11 = vpop.permute.xlu0 %5163  ;;  %5203 = vmatprep.subr.mxu0 %v5166_v10  ;;  %5322 = vmatprep.mubr.f32.mxu1 %v6524_v30 }
 0x58f   : > { %v5167_v13 = vsel %vm6764_vm3, %v5164_v11, %v5166_v10 }
 0x590   : > { %5204 = vmatpush1.msra.mxu0 %v5167_v13 }
 0x591   : > { %v5251_v14 = vpop.permute.xlu1 %5250  ;;  %5833 = vmatmul.mubr.msk.f32.vlgmr.msra.gmra.mxu0 %vm1860_vm12, %v5832_v12 }
 0x592   : > { %v5249_v15 = vpop.permute.xlu0 %5248  ;;  %5288 = vmatprep.subr.mxu1 %v5251_v14  ;;  %5407 = vmatprep.mubr.f32.mxu0 %v6524_v30 }
 0x593   : > { %v5252_v26 = vsel %vm6765_vm4, %v5249_v15, %v5251_v14 }
 0x594   : > { %5289 = vmatpush1.msra.mxu1 %v5252_v26 }
 0x595   : > { %v5336_v27 = vpop.permute.xlu1 %5335  ;;  %5835 = vmatmul.mubr.msk.f32.vlgmr.msra.gmra.mxu1 %vm1860_vm12, %v5834_v16 }
 0x596   : > { %v5334_v28 = vpop.permute.xlu0 %5333  ;;  %5373 = vmatprep.subr.mxu0 %v5336_v27  ;;  %5492 = vmatprep.mubr.f32.mxu1 %v6524_v30 }
 0x597   : > { %v5337_v31 = vsel %vm6766_vm5, %v5334_v28, %v5336_v27 }
 0x598   : > { %5374 = vmatpush1.msra.mxu0 %v5337_v31 }
 0x599   : > { %v5421_v33 = vpop.permute.xlu1 %5420  ;;  %5837 = vmatmul.mubr.msk.f32.vlgmr.msra.gmra.mxu0 %vm1860_vm12, %v5836_v29 }
 0x59a   : > { %v5419_v35 = vpop.permute.xlu0 %5418  ;;  %5458 = vmatprep.subr.mxu1 %v5421_v33  ;;  %5577 = vmatprep.mubr.f32.mxu0 %v6524_v30 }
 0x59b   : > { %v5422_v38 = vsel %vm6767_vm6, %v5419_v35, %v5421_v33 }
 0x59c   : > { %5459 = vmatpush1.msra.mxu1 %v5422_v38 }
 0x59d   : > { %v5506_v39 = vpop.permute.xlu1 %5505  ;;  %5839 = vmatmul.mubr.msk.f32.vlgmr.msra.gmra.mxu1 %vm1860_vm12, %v5838_v37 }
 0x59e   : > { %v5504_v40 = vpop.permute.xlu0 %5503  ;;  %5543 = vmatprep.subr.mxu0 %v5506_v39 }
 0x59f   : > { %v5507_v42 = vsel %vm6768_vm7, %v5504_v40, %v5506_v39 }
 0x5a0   : > { %5544 = vmatpush1.msra.mxu0 %v5507_v42 }
 0x5a1   : > { %5841 = vmatmul.mubr.msk.f32.vlgmr.msra.gmra.mxu0 %vm1860_vm12, %v5840_v41  ;;  %vm5610_vm12 = vcmask 321776  }
 0x5ab   : > { %v5590_v62 = vpop.permute.xlu0 %5589 }
 0x5d1   : > { %v4986_v30 = vpop.f32.mrf.mxu1 }
 0x5d3   : > { %v4988_v45 = vpop.f32.mrf.mxu1 }
 0x645   : > { %v4912_v43 = vpop.f32.mrf.mxu0 }
 0x646   : > { %v4987_v44 = vadd.f32 %v4986_v30, %v4912_v43 }
 0x647   : > { %v4914_v18 = vpop.f32.mrf.mxu0 }
 0x648   : > { %v4989_v52 = vadd.f32 %v4988_v45, %v4914_v18 }
 0x649   : > { %v5069_v46 = vpop.f32.mrf.mxu0 }
 0x64a   : > { %v5074_v47 = vadd.f32 %v5069_v46, %v4987_v44 }
 0x64b   : > { %v5071_v48 = vpop.f32.mrf.mxu0 }
 0x64c   : > { %v5075_v22 = vadd.f32 %v5071_v48, %v4989_v52 }
 0x64d   : > { %v5154_v49 = vpop.f32.mrf.mxu1 }
 0x64e   : > { %v5159_v50 = vadd.f32 %v5154_v49, %v5074_v47 }
 0x64f   : > { %v5156_v20 = vpop.f32.mrf.mxu1 }
 0x650   : > { %v5160_v57 = vadd.f32 %v5156_v20, %v5075_v22 }
 0x651   : > { %v5239_v51 = vpop.f32.mrf.mxu0 }
 0x652   : > { %v5244_v53 = vadd.f32 %v5239_v51, %v5159_v50 }
 0x653   : > { %v5241_v54 = vpop.f32.mrf.mxu0 }
 0x654   : > { %v5245_v32 = vadd.f32 %v5241_v54, %v5160_v57 }
 0x655   : > { %v5324_v17 = vpop.f32.mrf.mxu1 }
 0x656   : > { %v5329_v0 = vadd.f32 %v5324_v17, %v5244_v53 }
 0x657   : > { %v5326_v55 = vpop.f32.mrf.mxu1 }
 0x658   : > { %v5330_v63 = vadd.f32 %v5326_v55, %v5245_v32 }
 0x659   : > { %v5409_v56 = vpop.f32.mrf.mxu0 }
 0x65a   : > { %v5414_v58 = vadd.f32 %v5409_v56, %v5329_v0 }
 0x65b   : > { %v5411_v24 = vpop.f32.mrf.mxu0 }
 0x65c   : > { %v5415_v1 = vadd.f32 %v5411_v24, %v5330_v63 }
 0x65d   : > { %v5494_v19 = vpop.f32.mrf.mxu1 }
 0x65e   : > { %v5499_v59 = vadd.f32 %v5494_v19, %v5414_v58 }
 0x65f   : > { %v5496_v34 = vpop.f32.mrf.mxu1 }
 0x660   : > { %v5500_v2 = vadd.f32 %v5496_v34, %v5415_v1 }
 0x661   : > { %v5579_v60 = vpop.f32.mrf.mxu0 }
 0x662   : > { %v5584_v61 = vadd.f32 %v5579_v60, %v5499_v59 }
 0x663   : > { %v5581_v25 = vpop.f32.mrf.mxu0 }
 0x664   : > { %v5592_v21 = vadd.f32 %v5590_v62, %v5584_v61  ;;  %v5585_v3 = vadd.f32 %v5581_v25, %v5500_v2 }
 0x666   : > { %5602 = vrot.lane.b32.xlu0 %v5592_v21, %s5997_s21  ;;  %5597 = vrot.lane.b32.xlu1 %v5592_v21, %s5998_s22  ;;  %5595 = vst.msk [vmem:[%s6717_s20] sm:$0x7] %vm5594_vm8, %v5592_v21  ;;  %v5593_v36 = vadd.f32 %v5590_v62, %v5585_v3 }
 0x66a   : > { %5612 = vrot.lane.b32.xlu0 %v5592_v21, %s5999_s10  ;;  %5607 = vrot.lane.b32.xlu1 %v5592_v21, %s6000_s13 }
 0x66e   : > { %5622 = vrot.lane.b32.xlu0 %v5592_v21, %s6001_s27  ;;  %5617 = vrot.lane.b32.xlu1 %v5592_v21, %s5994_s29 }
 0x672   : > { %5630 = vrot.lane.b32.xlu0 %v5593_v36, %s5983_s24  ;;  %5628 = vrot.lane.b32.xlu1 %v5592_v21, %s5983_s24 }
 0x676   : > { %5641 = vrot.lane.b32.xlu0 %v5593_v36, %s6763_s14  ;;  %5636 = vrot.lane.b32.xlu1 %v5593_v36, %s6002_s28 }
 0x6d8   : > { %v5603_v23 = vpop.permute.xlu0 %5602  ;;  %v5598_v4 = vpop.permute.xlu1 %5597 }
 0x6d9   : > { %5601 = vst.msk [vmem:[%s6717_s20] sm:$0x7] %vm5600_vm9, %v5598_v4 }
 0x6da   : > { %5606 = vst.msk [vmem:[%s6717_s20] sm:$0x7] %vm5605_vm10, %v5603_v23 }
 0x6dc   : > { %v5613_v5 = vpop.permute.xlu0 %5612  ;;  %v5608_v6 = vpop.permute.xlu1 %5607 }
 0x6dd   : > { %5611 = vst.msk [vmem:[%s6717_s20] sm:$0x7] %vm5610_vm12, %v5608_v6 }
 0x6de   : > { %5616 = vst.msk [vmem:[%s6717_s20] sm:$0x7] %vm5615_vm11, %v5613_v5 }
 0x6e0   : > { %v5623_v7 = vpop.permute.xlu0 %5622  ;;  %v5618_v8 = vpop.permute.xlu1 %5617 }
 0x6e1   : > { %5621 = vst.msk [vmem:[%s6717_s20] sm:$0x7] %vm5620_vm1, %v5618_v8 }
 0x6e2   : > { %5626 = vst.msk [vmem:[%s6717_s20] sm:$0x7] %vm5625_vm2, %v5623_v7 }
 0x6e4   : > { %v5631_v9 = vpop.permute.xlu0 %5630  ;;  %v5629_v10 = vpop.permute.xlu1 %5628 }
 0x6e5   : > { %v5632_v11 = vsel %vm6769_vm14, %v5629_v10, %v5631_v9 }
 0x6e6   : > { %5635 = vst.msk [vmem:[%s6717_s20] sm:$0x7] %vm5634_vm13, %v5632_v11 }
 0x6e8   : > { %v5642_v12 = vpop.permute.xlu0 %5641  ;;  %v5637_v13 = vpop.permute.xlu1 %5636 }
 0x6e9   : > { %5640 = vst.msk [vmem:[%s6717_s20] sm:$0x7] %vm5639_vm15, %v5637_v13 }
 0x6ea   : > { %5645 = vst.msk [vmem:[%s6717_s20] sm:$0x7] %vm5644_vm0, %v5642_v12 }
 0x6eb PF: > { %s19_s30 = sadd.s32 1, %s5967_s30  }
 0x6ec   : > { %p16_p4 = scmp.ge.s32.totalorder %s19_s30, 4  }
 0x6ee   :  { %18 = sbr.rel (!%p16_p4) target bundleno = 1 (0x1), region = 134 }

</bundles_post_ra>
